<compile_context>
chip_gen: v7x
topology: tpu7x:2x2x1
jax: 0.10.0
libtpu: 0.0.40
codegen_flags: <defaults>
</compile_context>

<pallas_src>
import functools
import math

import numpy as np

import jax
import jax.numpy as jnp
from jax.experimental import pallas as pl
from jax.experimental.pallas import tpu as pltpu


FCW = 128  # padded FC width (hidden1=120, hidden2=80, classes all <= 128)


# ---------------------------------------------------------------------------
# Fused Pallas kernel (whole model)
# ---------------------------------------------------------------------------

def _make_fused_kernel(n_layers, T, B, H, Din):
    G2, G4, G6 = 2 * H, 4 * H, 6 * H
    NEG = 0.01  # nn.LeakyReLU default slope

    def kernel(xp_ref, gw_ref, gb_ref, fw_ref, fb_ref, y_ref, seq_ref, ig_ref):
        acc = jnp.zeros((B, G2), jnp.float32)
        row = 0
        for l in range(n_layers):
            kin = 2 * Din if l == 0 else G4
            wih = gw_ref[row:row + kin, :]                 # (kin, 6H) bf16
            whh = gw_ref[row + kin:row + kin + G2, :]      # (2H, 6H)  bf16
            row += kin + G2
            b_ig = gb_ref[2 * l:2 * l + 1, :]              # (1, 6H)  b_ih (+ b_hh for r,z)
            b_hn = gb_ref[2 * l + 1:2 * l + 2, :]          # (1, 6H)  zeros except n cols

            # Paired, time-aligned layer input: row block s already carries the
            # backward direction's time-reversed features (layout handled at pack time).
            pair = xp_ref[...] if l == 0 else seq_ref[...].astype(jnp.bfloat16)

            # Hoisted input projection for all steps & both directions.
            ig_ref[...] = (jnp.dot(pair, wih, preferred_element_type=jnp.float32)
                           + b_ig)                          # (T*B, 6H) f32

            last = (l == n_layers - 1)

            def step(s, carry):
                h, acc = carry                              # (B,2H) f32 each
                # One recurrent matmul drives both directions (block-diag W_hh).
                hg = jnp.dot(h.astype(jnp.bfloat16), whh,
                             preferred_element_type=jnp.float32) + b_hn      # (B,6H)
                r0 = pl.multiple_of(s * B, B)
                ig_s = ig_ref[pl.ds(r0, B), :]                               # (B,6H)

                rz = jax.nn.sigmoid(ig_s[:, :G4] + hg[:, :G4])   # one (B,4H) slab
                r, z = rz[:, :G2], rz[:, G2:]
                n = jnp.tanh(ig_s[:, G4:] + r * hg[:, G4:])      # (B,2H)
                h = (1.0 - z) * n + z * h                         # (B,2H)

                if last:
                    acc = acc + h     # time-mean is order-independent
                else:
                    # Paired layout for the next layer:
                    #   row t = [fwd(t) | bwd(T-1-t) | fwd(T-1-t) | bwd(t)]
                    seq_ref[pl.ds(r0, B), :G2] = h
                    r1 = pl.multiple_of((T - 1 - s) * B, B)
                    seq_ref[pl.ds(r1, B), G2:] = h
                return h, acc

            h0 = jnp.zeros((B, G2), jnp.float32)
            _, acc = jax.lax.fori_loop(0, T, step, (h0, acc), unroll=True)

        feat = acc * (1.0 / T)                               # (B, 2H) = [mean fwd | mean bwd]

        # ClassPredictor MLP (dropout == identity at inference).
        w1 = fw_ref[:G2, :]
        w2 = fw_ref[G2:G2 + FCW, :]
        w3 = fw_ref[G2 + FCW:G2 + 2 * FCW, :]
        a1 = jnp.dot(feat.astype(jnp.bfloat16), w1,
                     preferred_element_type=jnp.float32) + fb_ref[0:1, :]
        h1 = jnp.where(a1 > 0, a1, NEG * a1)
        a2 = jnp.dot(h1.astype(jnp.bfloat16), w2,
                     preferred_element_type=jnp.float32) + fb_ref[1:2, :]
        h2 = jnp.where(a2 > 0, a2, NEG * a2)
        y_ref[...] = jnp.dot(h2.astype(jnp.bfloat16), w3,
                             preferred_element_type=jnp.float32) + fb_ref[2:3, :]

    return kernel


# ---------------------------------------------------------------------------
# Wrapper
# ---------------------------------------------------------------------------

@functools.partial(jax.jit, static_argnums=(2,))
def bigru_model_forward(params, x, classes):
    """x: (B, T, input_dim) -> (B, classes)."""
    gru_w, gru_b = params["gru_w"], params["gru_b"]
    fc_w, fc_b = params["fc_w"], params["fc_b"]
    B, T, Din = x.shape
    H = gru_b.shape[1] // 6
    n_layers = gru_b.shape[0] // 2

    # Pad batch to a sublane multiple so every matmul / vector op is full-sublane.
    B_pad = max(8, ((B + 7) // 8) * 8)
    xf = x.astype(jnp.float32)
    if B_pad != B:
        xf = jnp.pad(xf, ((0, B_pad - B), (0, 0), (0, 0)))

    # Time-major paired input: row block t = [x(t) | x(T-1-t)]  (layout plumbing in XLA).
    xt = jnp.transpose(xf, (1, 0, 2))                           # (T, B_pad, Din)
    x_pair = jnp.concatenate([xt, xt[::-1]], axis=-1)           # (T, B_pad, 2*Din)
    x_pair = x_pair.reshape(T * B_pad, 2 * Din).astype(jnp.bfloat16)

    kernel = _make_fused_kernel(n_layers, T, B_pad, H, Din)
    vmem = pl.BlockSpec(memory_space=pltpu.MemorySpace.VMEM)
    y_pad = pl.pallas_call(
        kernel,
        out_shape=jax.ShapeDtypeStruct((B_pad, FCW), jnp.float32),
        in_specs=[vmem] * 5,
        out_specs=vmem,
        scratch_shapes=[
            pltpu.VMEM((T * B_pad, 4 * H), jnp.float32),   # paired inter-layer sequence
            pltpu.VMEM((T * B_pad, 6 * H), jnp.float32),   # hoisted input projection
        ],
    )(x_pair, gru_w, gru_b, fc_w, fc_b)
    return y_pad[:B, :classes]


# ---------------------------------------------------------------------------
# Parameter init (PyTorch-shaped raw weights, then repacked for the fused kernel)
# ---------------------------------------------------------------------------

def init_params(key, input_dim, hidden_dim, n_layers, classes):
    H = hidden_dim
    ksc = 1.0 / math.sqrt(H)
    assert classes <= FCW

    def uni(k, shape, s):
        return np.asarray(jax.random.uniform(k, shape, jnp.float32, -s, s))

    gru_raw = []
    w_blocks, b_rows = [], []
    for layer in range(n_layers):
        din = input_dim if layer == 0 else 2 * H
        dirs = []
        for _ in range(2):  # forward, backward
            key, k1, k2, k3, k4 = jax.random.split(key, 5)
            wih = uni(k1, (3 * H, din), ksc)     # PyTorch rows [r; z; n]
            whh = uni(k2, (3 * H, H), ksc)
            bih = uni(k3, (3 * H,), ksc)
            bhh = uni(k4, (3 * H,), ksc)
            dirs.append((wih, whh, bih, bhh))
        gru_raw.append(dirs)

        (wif, whf, bif, bhf), (wib, whb, bib, bhb) = dirs
        first = (layer == 0)
        kin = 2 * din if first else 4 * H
        wp = np.zeros((kin, 6 * H), np.float32)
        wh = np.zeros((2 * H, 6 * H), np.float32)
        big = np.zeros((6 * H,), np.float32)
        bhn = np.zeros((6 * H,), np.float32)
        for g in range(3):                      # 0=r, 1=z, 2=n; columns [g_f | g_b]
            cf = slice(2 * g * H, (2 * g + 1) * H)
            cb = slice((2 * g + 1) * H, (2 * g + 2) * H)
            gf = wif[g * H:(g + 1) * H, :].T    # (din, H)
            gb = wib[g * H:(g + 1) * H, :].T
            if first:
                # paired input row t = [x(t) | x(T-1-t)]
                wp[:din, cf] = gf
                wp[din:, cb] = gb
            else:
                # paired input row t = [fwd(t) | bwd(T-1-t) | fwd(T-1-t) | bwd(t)]
                wp[0:H, cf] = gf[:H]
                wp[3 * H:4 * H, cf] = gf[H:]
                wp[2 * H:3 * H, cb] = gb[:H]
                wp[H:2 * H, cb] = gb[H:]
            wh[:H, cf] = whf[g * H:(g + 1) * H, :].T      # h_fwd -> fwd gate cols
            wh[H:, cb] = whb[g * H:(g + 1) * H, :].T      # h_bwd -> bwd gate cols
            if g < 2:   # r, z: fold b_hh into the hoisted ig bias
                big[cf] = bif[g * H:(g + 1) * H] + bhf[g * H:(g + 1) * H]
                big[cb] = bib[g * H:(g + 1) * H] + bhb[g * H:(g + 1) * H]
            else:       # n: b_hn must stay inside the r* term
                big[cf] = bif[g * H:(g + 1) * H]
                big[cb] = bib[g * H:(g + 1) * H]
                bhn[cf] = bhf[g * H:(g + 1) * H]
                bhn[cb] = bhb[g * H:(g + 1) * H]
        w_blocks += [wp, wh]
        b_rows += [big, bhn]

    # ClassPredictor: Linear(2H,120) -> LeakyReLU -> Linear(120,80) -> LeakyReLU -> Linear(80,C)
    h1, h2 = 120, 80
    key, k1, k2, k3, k4, k5, k6 = jax.random.split(key, 7)
    w1 = uni(k1, (2 * H, h1), 1.0 / math.sqrt(2 * H))
    b1 = uni(k2, (h1,), 1.0 / math.sqrt(2 * H))
    w2 = uni(k3, (h1, h2), 1.0 / math.sqrt(h1))
    b2 = uni(k4, (h2,), 1.0 / math.sqrt(h1))
    w3 = uni(k5, (h2, classes), 1.0 / math.sqrt(h2))
    b3 = uni(k6, (classes,), 1.0 / math.sqrt(h2))
    fc_raw = (w1, b1, w2, b2, w3, b3)

    fcw = np.zeros((2 * H + 2 * FCW, FCW), np.float32)
    fcw[0:2 * H, :h1] = w1
    fcw[2 * H:2 * H + h1, :h2] = w2
    fcw[2 * H + FCW:2 * H + FCW + h2, :classes] = w3
    fcb = np.zeros((3, FCW), np.float32)
    fcb[0, :h1] = b1
    fcb[1, :h2] = b2
    fcb[2, :classes] = b3

    params = {
        "gru_w": jnp.asarray(np.concatenate(w_blocks, axis=0), jnp.bfloat16),
        "gru_b": jnp.asarray(np.stack(b_rows, axis=0), jnp.float32),
        "fc_w": jnp.asarray(fcw, jnp.bfloat16),
        "fc_b": jnp.asarray(fcb, jnp.float32),
    }
    return params, gru_raw, fc_raw


# ---------------------------------------------------------------------------
# Pure-JAX reference (PyTorch-layout weights) for a correctness check
# ---------------------------------------------------------------------------

def reference_forward(gru_raw, fc_raw, x, hidden_dim):
    H = hidden_dim
    B, T, _ = x.shape
    seq = jnp.transpose(x.astype(jnp.float32), (1, 0, 2))         # (T, B, Din)
    for dirs in gru_raw:
        outs = []
        for d in range(2):
            wih, whh, bih, bhh = [jnp.asarray(a) for a in dirs[d]]
            xs = seq if d == 0 else seq[::-1]
            h = jnp.zeros((B, H), jnp.float32)
            hs = []
            for t in range(T):
                gi = xs[t] @ wih.T + bih
                gh = h @ whh.T + bhh
                r = jax.nn.sigmoid(gi[:, :H] + gh[:, :H])
                z = jax.nn.sigmoid(gi[:, H:2 * H] + gh[:, H:2 * H])
                n = jnp.tanh(gi[:, 2 * H:] + r * gh[:, 2 * H:])
                h = (1.0 - z) * n + z * h
                hs.append(h)
            out = jnp.stack(hs)
            if d == 1:
                out = out[::-1]
            outs.append(out)
        seq = jnp.concatenate(outs, axis=-1)                       # (T, B, 2H)
    m = jnp.mean(seq, axis=0)
    w1, b1, w2, b2, w3, b3 = [jnp.asarray(a) for a in fc_raw]
    a1 = m @ w1 + b1
    h1 = jnp.where(a1 > 0, a1, 0.01 * a1)
    a2 = h1 @ w2 + b2
    h2 = jnp.where(a2 > 0, a2, 0.01 * a2)
    return h2 @ w3 + b3


# ---------------------------------------------------------------------------

if __name__ == "__main__":
    B, T = 2, 8
    input_dim, hidden_dim, n_layers, classes = 16, 32, 2, 5

    key = jax.random.PRNGKey(0)
    key, pkey, xkey = jax.random.split(key, 3)
    params, gru_raw, fc_raw = init_params(pkey, input_dim, hidden_dim, n_layers, classes)
    x = jax.random.normal(xkey, (B, T, input_dim), jnp.float32)

    y = bigru_model_forward(params, x, classes)
    y = jax.block_until_ready(y)
    assert y.shape == (B, classes), y.shape
    assert bool(jnp.all(jnp.isfinite(y)))

    with jax.default_matmul_precision("highest"):
        y_ref = reference_forward(gru_raw, fc_raw, x, hidden_dim)
    err = float(jnp.max(jnp.abs(y - y_ref)))
    # bf16 MXU operands vs f32 "highest" reference -> small numeric drift only.
    assert err < 2e-2, (err, np.asarray(y), np.asarray(y_ref))

    print("KERNEL_OK")
</pallas_src>

<mosaic_0001>
module attributes {stable_mosaic.version = 11 : i64} {
  func.func @kernel(%arg0: memref<64x32xbf16, #tpu.memory_space<vmem>>, %arg1: memref<288x192xbf16, #tpu.memory_space<vmem>>, %arg2: memref<4x192xf32, #tpu.memory_space<vmem>>, %arg3: memref<320x128xbf16, #tpu.memory_space<vmem>>, %arg4: memref<3x128xf32, #tpu.memory_space<vmem>>, %arg5: memref<8x128xf32, #tpu.memory_space<vmem>>, %arg6: memref<64x128xf32, #tpu.memory_space<vmem>>, %arg7: memref<64x192xf32, #tpu.memory_space<vmem>>) attributes {dimension_semantics = [], scalar_prefetch = 0 : i64, scratch_operands = 2 : i64, tpu.core_type = #tpu.core_type<tc>} {
    %cst = arith.constant 0.000000e+00 : f32
    %0 = vector.broadcast %cst : f32 to vector<8x64xf32>
    %c0 = arith.constant 0 : index
    %c0_0 = arith.constant 0 : index
    %1 = vector.load %arg1[%c0, %c0_0] : memref<288x192xbf16, #tpu.memory_space<vmem>>, vector<32x192xbf16>
    %c32 = arith.constant 32 : index
    %c0_1 = arith.constant 0 : index
    %2 = vector.load %arg1[%c32, %c0_1] : memref<288x192xbf16, #tpu.memory_space<vmem>>, vector<64x192xbf16>
    %c0_2 = arith.constant 0 : index
    %c0_3 = arith.constant 0 : index
    %3 = vector.load %arg2[%c0_2, %c0_3] : memref<4x192xf32, #tpu.memory_space<vmem>>, vector<1x192xf32>
    %c1 = arith.constant 1 : index
    %c0_4 = arith.constant 0 : index
    %4 = vector.load %arg2[%c1, %c0_4] : memref<4x192xf32, #tpu.memory_space<vmem>>, vector<1x192xf32>
    %c0_5 = arith.constant 0 : index
    %c0_6 = arith.constant 0 : index
    %5 = vector.load %arg0[%c0_5, %c0_6] : memref<64x32xbf16, #tpu.memory_space<vmem>>, vector<64x32xbf16>
    %cst_7 = arith.constant dense<0.000000e+00> : vector<64x192xf32>
    %6 = tpu.matmul %5, %1, %cst_7 {dimension_numbers = #tpu.dot_dimension_numbers<[1], [0], [0], [1], [0, 0, 1, 1], [], []>} : vector<64x32xbf16>, vector<32x192xbf16>, vector<64x192xf32> -> vector<64x192xf32>
    %7 = vector.broadcast %3 : vector<1x192xf32> to vector<64x192xf32>
    %8 = arith.addf %6, %7 : vector<64x192xf32>
    %c0_8 = arith.constant 0 : index
    %c0_9 = arith.constant 0 : index
    %9 = vector.load %arg7[%c0_8, %c0_9] : memref<64x192xf32, #tpu.memory_space<vmem>>, vector<64x192xf32>
    tpu.vector_store %arg7[%c0_8, %c0_9], %8 {strides = array<i32>} : memref<64x192xf32, #tpu.memory_space<vmem>>, vector<64x192xf32>,
    %cst_10 = arith.constant 0.000000e+00 : f32
    %10 = vector.broadcast %cst_10 : f32 to vector<8x64xf32>
    %c0_i32 = arith.constant 0 : i32
    %11 = arith.truncf %10 : vector<8x64xf32> to vector<8x64xbf16>
    %cst_11 = arith.constant dense<0.000000e+00> : vector<8x192xf32>
    %12 = tpu.matmul %11, %2, %cst_11 {dimension_numbers = #tpu.dot_dimension_numbers<[1], [0], [0], [1], [0, 0, 1, 1], [], []>} : vector<8x64xbf16>, vector<64x192xbf16>, vector<8x192xf32> -> vector<8x192xf32>
    %13 = vector.broadcast %4 : vector<1x192xf32> to vector<8x192xf32>
    %14 = arith.addf %12, %13 : vector<8x192xf32>
    %c8_i32 = arith.constant 8 : i32
    %15 = arith.muli %c0_i32, %c8_i32 : i32
    %16 = tpu.assume_multiple %15, 8 : i32
    %17 = arith.index_cast %16 : i32 to index
    %c0_12 = arith.constant 0 : index
    %18 = vector.load %arg7[%17, %c0_12] : memref<64x192xf32, #tpu.memory_space<vmem>>, vector<8x192xf32>
    %19 = vector.extract_strided_slice %18 {offsets = [0, 0], sizes = [8, 128], strides = [1, 1]} : vector<8x192xf32> to vector<8x128xf32>
    %20 = vector.extract_strided_slice %14 {offsets = [0, 0], sizes = [8, 128], strides = [1, 1]} : vector<8x192xf32> to vector<8x128xf32>
    %21 = arith.addf %19, %20 : vector<8x128xf32>
    %22 = arith.negf %21 : vector<8x128xf32>
    %23 = math.exp %22 : vector<8x128xf32>
    %cst_13 = arith.constant 1.000000e+00 : f32
    %24 = vector.broadcast %cst_13 : f32 to vector<8x128xf32>
    %25 = arith.addf %24, %23 : vector<8x128xf32>
    %26 = arith.divf %24, %25 : vector<8x128xf32>
    %27 = vector.extract_strided_slice %26 {offsets = [0, 0], sizes = [8, 64], strides = [1, 1]} : vector<8x128xf32> to vector<8x64xf32>
    %28 = vector.extract_strided_slice %26 {offsets = [0, 64], sizes = [8, 64], strides = [1, 1]} : vector<8x128xf32> to vector<8x64xf32>
    %29 = vector.extract_strided_slice %18 {offsets = [0, 128], sizes = [8, 64], strides = [1, 1]} : vector<8x192xf32> to vector<8x64xf32>
    %30 = vector.extract_strided_slice %14 {offsets = [0, 128], sizes = [8, 64], strides = [1, 1]} : vector<8x192xf32> to vector<8x64xf32>
    %31 = arith.mulf %27, %30 : vector<8x64xf32>
    %32 = arith.addf %29, %31 : vector<8x64xf32>
    %33 = math.tanh %32 : vector<8x64xf32>
    %cst_14 = arith.constant 1.000000e+00 : f32
    %34 = vector.broadcast %cst_14 : f32 to vector<8x64xf32>
    %35 = arith.subf %34, %28 : vector<8x64xf32>
    %36 = arith.mulf %35, %33 : vector<8x64xf32>
    %37 = arith.mulf %28, %10 : vector<8x64xf32>
    %38 = arith.addf %36, %37 : vector<8x64xf32>
    %39 = arith.index_cast %16 : i32 to index
    %c0_15 = arith.constant 0 : index
    %40 = vector.load %arg6[%39, %c0_15] : memref<64x128xf32, #tpu.memory_space<vmem>>, vector<8x64xf32>
    tpu.vector_store %arg6[%39, %c0_15], %38 {strides = array<i32>} : memref<64x128xf32, #tpu.memory_space<vmem>>, vector<8x64xf32>,
    %c7_i32 = arith.constant 7 : i32
    %41 = arith.subi %c7_i32, %c0_i32 : i32
    %c8_i32_16 = arith.constant 8 : i32
    %42 = arith.muli %41, %c8_i32_16 : i32
    %43 = tpu.assume_multiple %42, 8 : i32
    %44 = arith.index_cast %43 : i32 to index
    %c64 = arith.constant 64 : index
    %45 = vector.load %arg6[%44, %c64] : memref<64x128xf32, #tpu.memory_space<vmem>>, vector<8x64xf32>
    tpu.vector_store %arg6[%44, %c64], %38 {strides = array<i32>} : memref<64x128xf32, #tpu.memory_space<vmem>>, vector<8x64xf32>,
    %c1_i32 = arith.constant 1 : i32
    %46 = arith.truncf %38 : vector<8x64xf32> to vector<8x64xbf16>
    %cst_17 = arith.constant dense<0.000000e+00> : vector<8x192xf32>
    %47 = tpu.matmul %46, %2, %cst_17 {dimension_numbers = #tpu.dot_dimension_numbers<[1], [0], [0], [1], [0, 0, 1, 1], [], []>} : vector<8x64xbf16>, vector<64x192xbf16>, vector<8x192xf32> -> vector<8x192xf32>
    %48 = vector.broadcast %4 : vector<1x192xf32> to vector<8x192xf32>
    %49 = arith.addf %47, %48 : vector<8x192xf32>
    %c8_i32_18 = arith.constant 8 : i32
    %50 = arith.muli %c1_i32, %c8_i32_18 : i32
    %51 = tpu.assume_multiple %50, 8 : i32
    %52 = arith.index_cast %51 : i32 to index
    %c0_19 = arith.constant 0 : index
    %53 = vector.load %arg7[%52, %c0_19] : memref<64x192xf32, #tpu.memory_space<vmem>>, vector<8x192xf32>
    %54 = vector.extract_strided_slice %53 {offsets = [0, 0], sizes = [8, 128], strides = [1, 1]} : vector<8x192xf32> to vector<8x128xf32>
    %55 = vector.extract_strided_slice %49 {offsets = [0, 0], sizes = [8, 128], strides = [1, 1]} : vector<8x192xf32> to vector<8x128xf32>
    %56 = arith.addf %54, %55 : vector<8x128xf32>
    %57 = arith.negf %56 : vector<8x128xf32>
    %58 = math.exp %57 : vector<8x128xf32>
    %cst_20 = arith.constant 1.000000e+00 : f32
    %59 = vector.broadcast %cst_20 : f32 to vector<8x128xf32>
    %60 = arith.addf %59, %58 : vector<8x128xf32>
    %61 = arith.divf %59, %60 : vector<8x128xf32>
    %62 = vector.extract_strided_slice %61 {offsets = [0, 0], sizes = [8, 64], strides = [1, 1]} : vector<8x128xf32> to vector<8x64xf32>
    %63 = vector.extract_strided_slice %61 {offsets = [0, 64], sizes = [8, 64], strides = [1, 1]} : vector<8x128xf32> to vector<8x64xf32>
    %64 = vector.extract_strided_slice %53 {offsets = [0, 128], sizes = [8, 64], strides = [1, 1]} : vector<8x192xf32> to vector<8x64xf32>
    %65 = vector.extract_strided_slice %49 {offsets = [0, 128], sizes = [8, 64], strides = [1, 1]} : vector<8x192xf32> to vector<8x64xf32>
    %66 = arith.mulf %62, %65 : vector<8x64xf32>
    %67 = arith.addf %64, %66 : vector<8x64xf32>
    %68 = math.tanh %67 : vector<8x64xf32>
    %cst_21 = arith.constant 1.000000e+00 : f32
    %69 = vector.broadcast %cst_21 : f32 to vector<8x64xf32>
    %70 = arith.subf %69, %63 : vector<8x64xf32>
    %71 = arith.mulf %70, %68 : vector<8x64xf32>
    %72 = arith.mulf %63, %38 : vector<8x64xf32>
    %73 = arith.addf %71, %72 : vector<8x64xf32>
    %74 = arith.index_cast %51 : i32 to index
    %c0_22 = arith.constant 0 : index
    %75 = vector.load %arg6[%74, %c0_22] : memref<64x128xf32, #tpu.memory_space<vmem>>, vector<8x64xf32>
    tpu.vector_store %arg6[%74, %c0_22], %73 {strides = array<i32>} : memref<64x128xf32, #tpu.memory_space<vmem>>, vector<8x64xf32>,
    %c7_i32_23 = arith.constant 7 : i32
    %76 = arith.subi %c7_i32_23, %c1_i32 : i32
    %c8_i32_24 = arith.constant 8 : i32
    %77 = arith.muli %76, %c8_i32_24 : i32
    %78 = tpu.assume_multiple %77, 8 : i32
    %79 = arith.index_cast %78 : i32 to index
    %c64_25 = arith.constant 64 : index
    %80 = vector.load %arg6[%79, %c64_25] : memref<64x128xf32, #tpu.memory_space<vmem>>, vector<8x64xf32>
    tpu.vector_store %arg6[%79, %c64_25], %73 {strides = array<i32>} : memref<64x128xf32, #tpu.memory_space<vmem>>, vector<8x64xf32>,
    %c2_i32 = arith.constant 2 : i32
    %81 = arith.truncf %73 : vector<8x64xf32> to vector<8x64xbf16>
    %cst_26 = arith.constant dense<0.000000e+00> : vector<8x192xf32>
    %82 = tpu.matmul %81, %2, %cst_26 {dimension_numbers = #tpu.dot_dimension_numbers<[1], [0], [0], [1], [0, 0, 1, 1], [], []>} : vector<8x64xbf16>, vector<64x192xbf16>, vector<8x192xf32> -> vector<8x192xf32>
    %83 = vector.broadcast %4 : vector<1x192xf32> to vector<8x192xf32>
    %84 = arith.addf %82, %83 : vector<8x192xf32>
    %c8_i32_27 = arith.constant 8 : i32
    %85 = arith.muli %c2_i32, %c8_i32_27 : i32
    %86 = tpu.assume_multiple %85, 8 : i32
    %87 = arith.index_cast %86 : i32 to index
    %c0_28 = arith.constant 0 : index
    %88 = vector.load %arg7[%87, %c0_28] : memref<64x192xf32, #tpu.memory_space<vmem>>, vector<8x192xf32>
    %89 = vector.extract_strided_slice %88 {offsets = [0, 0], sizes = [8, 128], strides = [1, 1]} : vector<8x192xf32> to vector<8x128xf32>
    %90 = vector.extract_strided_slice %84 {offsets = [0, 0], sizes = [8, 128], strides = [1, 1]} : vector<8x192xf32> to vector<8x128xf32>
    %91 = arith.addf %89, %90 : vector<8x128xf32>
    %92 = arith.negf %91 : vector<8x128xf32>
    %93 = math.exp %92 : vector<8x128xf32>
    %cst_29 = arith.constant 1.000000e+00 : f32
    %94 = vector.broadcast %cst_29 : f32 to vector<8x128xf32>
    %95 = arith.addf %94, %93 : vector<8x128xf32>
    %96 = arith.divf %94, %95 : vector<8x128xf32>
    %97 = vector.extract_strided_slice %96 {offsets = [0, 0], sizes = [8, 64], strides = [1, 1]} : vector<8x128xf32> to vector<8x64xf32>
    %98 = vector.extract_strided_slice %96 {offsets = [0, 64], sizes = [8, 64], strides = [1, 1]} : vector<8x128xf32> to vector<8x64xf32>
    %99 = vector.extract_strided_slice %88 {offsets = [0, 128], sizes = [8, 64], strides = [1, 1]} : vector<8x192xf32> to vector<8x64xf32>
    %100 = vector.extract_strided_slice %84 {offsets = [0, 128], sizes = [8, 64], strides = [1, 1]} : vector<8x192xf32> to vector<8x64xf32>
    %101 = arith.mulf %97, %100 : vector<8x64xf32>
    %102 = arith.addf %99, %101 : vector<8x64xf32>
    %103 = math.tanh %102 : vector<8x64xf32>
    %cst_30 = arith.constant 1.000000e+00 : f32
    %104 = vector.broadcast %cst_30 : f32 to vector<8x64xf32>
    %105 = arith.subf %104, %98 : vector<8x64xf32>
    %106 = arith.mulf %105, %103 : vector<8x64xf32>
    %107 = arith.mulf %98, %73 : vector<8x64xf32>
    %108 = arith.addf %106, %107 : vector<8x64xf32>
    %109 = arith.index_cast %86 : i32 to index
    %c0_31 = arith.constant 0 : index
    %110 = vector.load %arg6[%109, %c0_31] : memref<64x128xf32, #tpu.memory_space<vmem>>, vector<8x64xf32>
    tpu.vector_store %arg6[%109, %c0_31], %108 {strides = array<i32>} : memref<64x128xf32, #tpu.memory_space<vmem>>, vector<8x64xf32>,
    %c7_i32_32 = arith.constant 7 : i32
    %111 = arith.subi %c7_i32_32, %c2_i32 : i32
    %c8_i32_33 = arith.constant 8 : i32
    %112 = arith.muli %111, %c8_i32_33 : i32
    %113 = tpu.assume_multiple %112, 8 : i32
    %114 = arith.index_cast %113 : i32 to index
    %c64_34 = arith.constant 64 : index
    %115 = vector.load %arg6[%114, %c64_34] : memref<64x128xf32, #tpu.memory_space<vmem>>, vector<8x64xf32>
    tpu.vector_store %arg6[%114, %c64_34], %108 {strides = array<i32>} : memref<64x128xf32, #tpu.memory_space<vmem>>, vector<8x64xf32>,
    %c3_i32 = arith.constant 3 : i32
    %116 = arith.truncf %108 : vector<8x64xf32> to vector<8x64xbf16>
    %cst_35 = arith.constant dense<0.000000e+00> : vector<8x192xf32>
    %117 = tpu.matmul %116, %2, %cst_35 {dimension_numbers = #tpu.dot_dimension_numbers<[1], [0], [0], [1], [0, 0, 1, 1], [], []>} : vector<8x64xbf16>, vector<64x192xbf16>, vector<8x192xf32> -> vector<8x192xf32>
    %118 = vector.broadcast %4 : vector<1x192xf32> to vector<8x192xf32>
    %119 = arith.addf %117, %118 : vector<8x192xf32>
    %c8_i32_36 = arith.constant 8 : i32
    %120 = arith.muli %c3_i32, %c8_i32_36 : i32
    %121 = tpu.assume_multiple %120, 8 : i32
    %122 = arith.index_cast %121 : i32 to index
    %c0_37 = arith.constant 0 : index
    %123 = vector.load %arg7[%122, %c0_37] : memref<64x192xf32, #tpu.memory_space<vmem>>, vector<8x192xf32>
    %124 = vector.extract_strided_slice %123 {offsets = [0, 0], sizes = [8, 128], strides = [1, 1]} : vector<8x192xf32> to vector<8x128xf32>
    %125 = vector.extract_strided_slice %119 {offsets = [0, 0], sizes = [8, 128], strides = [1, 1]} : vector<8x192xf32> to vector<8x128xf32>
    %126 = arith.addf %124, %125 : vector<8x128xf32>
    %127 = arith.negf %126 : vector<8x128xf32>
    %128 = math.exp %127 : vector<8x128xf32>
    %cst_38 = arith.constant 1.000000e+00 : f32
    %129 = vector.broadcast %cst_38 : f32 to vector<8x128xf32>
    %130 = arith.addf %129, %128 : vector<8x128xf32>
    %131 = arith.divf %129, %130 : vector<8x128xf32>
    %132 = vector.extract_strided_slice %131 {offsets = [0, 0], sizes = [8, 64], strides = [1, 1]} : vector<8x128xf32> to vector<8x64xf32>
    %133 = vector.extract_strided_slice %131 {offsets = [0, 64], sizes = [8, 64], strides = [1, 1]} : vector<8x128xf32> to vector<8x64xf32>
    %134 = vector.extract_strided_slice %123 {offsets = [0, 128], sizes = [8, 64], strides = [1, 1]} : vector<8x192xf32> to vector<8x64xf32>
    %135 = vector.extract_strided_slice %119 {offsets = [0, 128], sizes = [8, 64], strides = [1, 1]} : vector<8x192xf32> to vector<8x64xf32>
    %136 = arith.mulf %132, %135 : vector<8x64xf32>
    %137 = arith.addf %134, %136 : vector<8x64xf32>
    %138 = math.tanh %137 : vector<8x64xf32>
    %cst_39 = arith.constant 1.000000e+00 : f32
    %139 = vector.broadcast %cst_39 : f32 to vector<8x64xf32>
    %140 = arith.subf %139, %133 : vector<8x64xf32>
    %141 = arith.mulf %140, %138 : vector<8x64xf32>
    %142 = arith.mulf %133, %108 : vector<8x64xf32>
    %143 = arith.addf %141, %142 : vector<8x64xf32>
    %144 = arith.index_cast %121 : i32 to index
    %c0_40 = arith.constant 0 : index
    %145 = vector.load %arg6[%144, %c0_40] : memref<64x128xf32, #tpu.memory_space<vmem>>, vector<8x64xf32>
    tpu.vector_store %arg6[%144, %c0_40], %143 {strides = array<i32>} : memref<64x128xf32, #tpu.memory_space<vmem>>, vector<8x64xf32>,
    %c7_i32_41 = arith.constant 7 : i32
    %146 = arith.subi %c7_i32_41, %c3_i32 : i32
    %c8_i32_42 = arith.constant 8 : i32
    %147 = arith.muli %146, %c8_i32_42 : i32
    %148 = tpu.assume_multiple %147, 8 : i32
    %149 = arith.index_cast %148 : i32 to index
    %c64_43 = arith.constant 64 : index
    %150 = vector.load %arg6[%149, %c64_43] : memref<64x128xf32, #tpu.memory_space<vmem>>, vector<8x64xf32>
    tpu.vector_store %arg6[%149, %c64_43], %143 {strides = array<i32>} : memref<64x128xf32, #tpu.memory_space<vmem>>, vector<8x64xf32>,
    %c4_i32 = arith.constant 4 : i32
    %151 = arith.truncf %143 : vector<8x64xf32> to vector<8x64xbf16>
    %cst_44 = arith.constant dense<0.000000e+00> : vector<8x192xf32>
    %152 = tpu.matmul %151, %2, %cst_44 {dimension_numbers = #tpu.dot_dimension_numbers<[1], [0], [0], [1], [0, 0, 1, 1], [], []>} : vector<8x64xbf16>, vector<64x192xbf16>, vector<8x192xf32> -> vector<8x192xf32>
    %153 = vector.broadcast %4 : vector<1x192xf32> to vector<8x192xf32>
    %154 = arith.addf %152, %153 : vector<8x192xf32>
    %c8_i32_45 = arith.constant 8 : i32
    %155 = arith.muli %c4_i32, %c8_i32_45 : i32
    %156 = tpu.assume_multiple %155, 8 : i32
    %157 = arith.index_cast %156 : i32 to index
    %c0_46 = arith.constant 0 : index
    %158 = vector.load %arg7[%157, %c0_46] : memref<64x192xf32, #tpu.memory_space<vmem>>, vector<8x192xf32>
    %159 = vector.extract_strided_slice %158 {offsets = [0, 0], sizes = [8, 128], strides = [1, 1]} : vector<8x192xf32> to vector<8x128xf32>
    %160 = vector.extract_strided_slice %154 {offsets = [0, 0], sizes = [8, 128], strides = [1, 1]} : vector<8x192xf32> to vector<8x128xf32>
    %161 = arith.addf %159, %160 : vector<8x128xf32>
    %162 = arith.negf %161 : vector<8x128xf32>
    %163 = math.exp %162 : vector<8x128xf32>
    %cst_47 = arith.constant 1.000000e+00 : f32
    %164 = vector.broadcast %cst_47 : f32 to vector<8x128xf32>
    %165 = arith.addf %164, %163 : vector<8x128xf32>
    %166 = arith.divf %164, %165 : vector<8x128xf32>
    %167 = vector.extract_strided_slice %166 {offsets = [0, 0], sizes = [8, 64], strides = [1, 1]} : vector<8x128xf32> to vector<8x64xf32>
    %168 = vector.extract_strided_slice %166 {offsets = [0, 64], sizes = [8, 64], strides = [1, 1]} : vector<8x128xf32> to vector<8x64xf32>
    %169 = vector.extract_strided_slice %158 {offsets = [0, 128], sizes = [8, 64], strides = [1, 1]} : vector<8x192xf32> to vector<8x64xf32>
    %170 = vector.extract_strided_slice %154 {offsets = [0, 128], sizes = [8, 64], strides = [1, 1]} : vector<8x192xf32> to vector<8x64xf32>
    %171 = arith.mulf %167, %170 : vector<8x64xf32>
    %172 = arith.addf %169, %171 : vector<8x64xf32>
    %173 = math.tanh %172 : vector<8x64xf32>
    %cst_48 = arith.constant 1.000000e+00 : f32
    %174 = vector.broadcast %cst_48 : f32 to vector<8x64xf32>
    %175 = arith.subf %174, %168 : vector<8x64xf32>
    %176 = arith.mulf %175, %173 : vector<8x64xf32>
    %177 = arith.mulf %168, %143 : vector<8x64xf32>
    %178 = arith.addf %176, %177 : vector<8x64xf32>
    %179 = arith.index_cast %156 : i32 to index
    %c0_49 = arith.constant 0 : index
    %180 = vector.load %arg6[%179, %c0_49] : memref<64x128xf32, #tpu.memory_space<vmem>>, vector<8x64xf32>
    tpu.vector_store %arg6[%179, %c0_49], %178 {strides = array<i32>} : memref<64x128xf32, #tpu.memory_space<vmem>>, vector<8x64xf32>,
    %c7_i32_50 = arith.constant 7 : i32
    %181 = arith.subi %c7_i32_50, %c4_i32 : i32
    %c8_i32_51 = arith.constant 8 : i32
    %182 = arith.muli %181, %c8_i32_51 : i32
    %183 = tpu.assume_multiple %182, 8 : i32
    %184 = arith.index_cast %183 : i32 to index
    %c64_52 = arith.constant 64 : index
    %185 = vector.load %arg6[%184, %c64_52] : memref<64x128xf32, #tpu.memory_space<vmem>>, vector<8x64xf32>
    tpu.vector_store %arg6[%184, %c64_52], %178 {strides = array<i32>} : memref<64x128xf32, #tpu.memory_space<vmem>>, vector<8x64xf32>,
    %c5_i32 = arith.constant 5 : i32
    %186 = arith.truncf %178 : vector<8x64xf32> to vector<8x64xbf16>
    %cst_53 = arith.constant dense<0.000000e+00> : vector<8x192xf32>
    %187 = tpu.matmul %186, %2, %cst_53 {dimension_numbers = #tpu.dot_dimension_numbers<[1], [0], [0], [1], [0, 0, 1, 1], [], []>} : vector<8x64xbf16>, vector<64x192xbf16>, vector<8x192xf32> -> vector<8x192xf32>
    %188 = vector.broadcast %4 : vector<1x192xf32> to vector<8x192xf32>
    %189 = arith.addf %187, %188 : vector<8x192xf32>
    %c8_i32_54 = arith.constant 8 : i32
    %190 = arith.muli %c5_i32, %c8_i32_54 : i32
    %191 = tpu.assume_multiple %190, 8 : i32
    %192 = arith.index_cast %191 : i32 to index
    %c0_55 = arith.constant 0 : index
    %193 = vector.load %arg7[%192, %c0_55] : memref<64x192xf32, #tpu.memory_space<vmem>>, vector<8x192xf32>
    %194 = vector.extract_strided_slice %193 {offsets = [0, 0], sizes = [8, 128], strides = [1, 1]} : vector<8x192xf32> to vector<8x128xf32>
    %195 = vector.extract_strided_slice %189 {offsets = [0, 0], sizes = [8, 128], strides = [1, 1]} : vector<8x192xf32> to vector<8x128xf32>
    %196 = arith.addf %194, %195 : vector<8x128xf32>
    %197 = arith.negf %196 : vector<8x128xf32>
    %198 = math.exp %197 : vector<8x128xf32>
    %cst_56 = arith.constant 1.000000e+00 : f32
    %199 = vector.broadcast %cst_56 : f32 to vector<8x128xf32>
    %200 = arith.addf %199, %198 : vector<8x128xf32>
    %201 = arith.divf %199, %200 : vector<8x128xf32>
    %202 = vector.extract_strided_slice %201 {offsets = [0, 0], sizes = [8, 64], strides = [1, 1]} : vector<8x128xf32> to vector<8x64xf32>
    %203 = vector.extract_strided_slice %201 {offsets = [0, 64], sizes = [8, 64], strides = [1, 1]} : vector<8x128xf32> to vector<8x64xf32>
    %204 = vector.extract_strided_slice %193 {offsets = [0, 128], sizes = [8, 64], strides = [1, 1]} : vector<8x192xf32> to vector<8x64xf32>
    %205 = vector.extract_strided_slice %189 {offsets = [0, 128], sizes = [8, 64], strides = [1, 1]} : vector<8x192xf32> to vector<8x64xf32>
    %206 = arith.mulf %202, %205 : vector<8x64xf32>
    %207 = arith.addf %204, %206 : vector<8x64xf32>
    %208 = math.tanh %207 : vector<8x64xf32>
    %cst_57 = arith.constant 1.000000e+00 : f32
    %209 = vector.broadcast %cst_57 : f32 to vector<8x64xf32>
    %210 = arith.subf %209, %203 : vector<8x64xf32>
    %211 = arith.mulf %210, %208 : vector<8x64xf32>
    %212 = arith.mulf %203, %178 : vector<8x64xf32>
    %213 = arith.addf %211, %212 : vector<8x64xf32>
    %214 = arith.index_cast %191 : i32 to index
    %c0_58 = arith.constant 0 : index
    %215 = vector.load %arg6[%214, %c0_58] : memref<64x128xf32, #tpu.memory_space<vmem>>, vector<8x64xf32>
    tpu.vector_store %arg6[%214, %c0_58], %213 {strides = array<i32>} : memref<64x128xf32, #tpu.memory_space<vmem>>, vector<8x64xf32>,
    %c7_i32_59 = arith.constant 7 : i32
    %216 = arith.subi %c7_i32_59, %c5_i32 : i32
    %c8_i32_60 = arith.constant 8 : i32
    %217 = arith.muli %216, %c8_i32_60 : i32
    %218 = tpu.assume_multiple %217, 8 : i32
    %219 = arith.index_cast %218 : i32 to index
    %c64_61 = arith.constant 64 : index
    %220 = vector.load %arg6[%219, %c64_61] : memref<64x128xf32, #tpu.memory_space<vmem>>, vector<8x64xf32>
    tpu.vector_store %arg6[%219, %c64_61], %213 {strides = array<i32>} : memref<64x128xf32, #tpu.memory_space<vmem>>, vector<8x64xf32>,
    %c6_i32 = arith.constant 6 : i32
    %221 = arith.truncf %213 : vector<8x64xf32> to vector<8x64xbf16>
    %cst_62 = arith.constant dense<0.000000e+00> : vector<8x192xf32>
    %222 = tpu.matmul %221, %2, %cst_62 {dimension_numbers = #tpu.dot_dimension_numbers<[1], [0], [0], [1], [0, 0, 1, 1], [], []>} : vector<8x64xbf16>, vector<64x192xbf16>, vector<8x192xf32> -> vector<8x192xf32>
    %223 = vector.broadcast %4 : vector<1x192xf32> to vector<8x192xf32>
    %224 = arith.addf %222, %223 : vector<8x192xf32>
    %c8_i32_63 = arith.constant 8 : i32
    %225 = arith.muli %c6_i32, %c8_i32_63 : i32
    %226 = tpu.assume_multiple %225, 8 : i32
    %227 = arith.index_cast %226 : i32 to index
    %c0_64 = arith.constant 0 : index
    %228 = vector.load %arg7[%227, %c0_64] : memref<64x192xf32, #tpu.memory_space<vmem>>, vector<8x192xf32>
    %229 = vector.extract_strided_slice %228 {offsets = [0, 0], sizes = [8, 128], strides = [1, 1]} : vector<8x192xf32> to vector<8x128xf32>
    %230 = vector.extract_strided_slice %224 {offsets = [0, 0], sizes = [8, 128], strides = [1, 1]} : vector<8x192xf32> to vector<8x128xf32>
    %231 = arith.addf %229, %230 : vector<8x128xf32>
    %232 = arith.negf %231 : vector<8x128xf32>
    %233 = math.exp %232 : vector<8x128xf32>
    %cst_65 = arith.constant 1.000000e+00 : f32
    %234 = vector.broadcast %cst_65 : f32 to vector<8x128xf32>
    %235 = arith.addf %234, %233 : vector<8x128xf32>
    %236 = arith.divf %234, %235 : vector<8x128xf32>
    %237 = vector.extract_strided_slice %236 {offsets = [0, 0], sizes = [8, 64], strides = [1, 1]} : vector<8x128xf32> to vector<8x64xf32>
    %238 = vector.extract_strided_slice %236 {offsets = [0, 64], sizes = [8, 64], strides = [1, 1]} : vector<8x128xf32> to vector<8x64xf32>
    %239 = vector.extract_strided_slice %228 {offsets = [0, 128], sizes = [8, 64], strides = [1, 1]} : vector<8x192xf32> to vector<8x64xf32>
    %240 = vector.extract_strided_slice %224 {offsets = [0, 128], sizes = [8, 64], strides = [1, 1]} : vector<8x192xf32> to vector<8x64xf32>
    %241 = arith.mulf %237, %240 : vector<8x64xf32>
    %242 = arith.addf %239, %241 : vector<8x64xf32>
    %243 = math.tanh %242 : vector<8x64xf32>
    %cst_66 = arith.constant 1.000000e+00 : f32
    %244 = vector.broadcast %cst_66 : f32 to vector<8x64xf32>
    %245 = arith.subf %244, %238 : vector<8x64xf32>
    %246 = arith.mulf %245, %243 : vector<8x64xf32>
    %247 = arith.mulf %238, %213 : vector<8x64xf32>
    %248 = arith.addf %246, %247 : vector<8x64xf32>
    %249 = arith.index_cast %226 : i32 to index
    %c0_67 = arith.constant 0 : index
    %250 = vector.load %arg6[%249, %c0_67] : memref<64x128xf32, #tpu.memory_space<vmem>>, vector<8x64xf32>
    tpu.vector_store %arg6[%249, %c0_67], %248 {strides = array<i32>} : memref<64x128xf32, #tpu.memory_space<vmem>>, vector<8x64xf32>,
    %c7_i32_68 = arith.constant 7 : i32
    %251 = arith.subi %c7_i32_68, %c6_i32 : i32
    %c8_i32_69 = arith.constant 8 : i32
    %252 = arith.muli %251, %c8_i32_69 : i32
    %253 = tpu.assume_multiple %252, 8 : i32
    %254 = arith.index_cast %253 : i32 to index
    %c64_70 = arith.constant 64 : index
    %255 = vector.load %arg6[%254, %c64_70] : memref<64x128xf32, #tpu.memory_space<vmem>>, vector<8x64xf32>
    tpu.vector_store %arg6[%254, %c64_70], %248 {strides = array<i32>} : memref<64x128xf32, #tpu.memory_space<vmem>>, vector<8x64xf32>,
    %c7_i32_71 = arith.constant 7 : i32
    %256 = arith.truncf %248 : vector<8x64xf32> to vector<8x64xbf16>
    %cst_72 = arith.constant dense<0.000000e+00> : vector<8x192xf32>
    %257 = tpu.matmul %256, %2, %cst_72 {dimension_numbers = #tpu.dot_dimension_numbers<[1], [0], [0], [1], [0, 0, 1, 1], [], []>} : vector<8x64xbf16>, vector<64x192xbf16>, vector<8x192xf32> -> vector<8x192xf32>
    %258 = vector.broadcast %4 : vector<1x192xf32> to vector<8x192xf32>
    %259 = arith.addf %257, %258 : vector<8x192xf32>
    %c8_i32_73 = arith.constant 8 : i32
    %260 = arith.muli %c7_i32_71, %c8_i32_73 : i32
    %261 = tpu.assume_multiple %260, 8 : i32
    %262 = arith.index_cast %261 : i32 to index
    %c0_74 = arith.constant 0 : index
    %263 = vector.load %arg7[%262, %c0_74] : memref<64x192xf32, #tpu.memory_space<vmem>>, vector<8x192xf32>
    %264 = vector.extract_strided_slice %263 {offsets = [0, 0], sizes = [8, 128], strides = [1, 1]} : vector<8x192xf32> to vector<8x128xf32>
    %265 = vector.extract_strided_slice %259 {offsets = [0, 0], sizes = [8, 128], strides = [1, 1]} : vector<8x192xf32> to vector<8x128xf32>
    %266 = arith.addf %264, %265 : vector<8x128xf32>
    %267 = arith.negf %266 : vector<8x128xf32>
    %268 = math.exp %267 : vector<8x128xf32>
    %cst_75 = arith.constant 1.000000e+00 : f32
    %269 = vector.broadcast %cst_75 : f32 to vector<8x128xf32>
    %270 = arith.addf %269, %268 : vector<8x128xf32>
    %271 = arith.divf %269, %270 : vector<8x128xf32>
    %272 = vector.extract_strided_slice %271 {offsets = [0, 0], sizes = [8, 64], strides = [1, 1]} : vector<8x128xf32> to vector<8x64xf32>
    %273 = vector.extract_strided_slice %271 {offsets = [0, 64], sizes = [8, 64], strides = [1, 1]} : vector<8x128xf32> to vector<8x64xf32>
    %274 = vector.extract_strided_slice %263 {offsets = [0, 128], sizes = [8, 64], strides = [1, 1]} : vector<8x192xf32> to vector<8x64xf32>
    %275 = vector.extract_strided_slice %259 {offsets = [0, 128], sizes = [8, 64], strides = [1, 1]} : vector<8x192xf32> to vector<8x64xf32>
    %276 = arith.mulf %272, %275 : vector<8x64xf32>
    %277 = arith.addf %274, %276 : vector<8x64xf32>
    %278 = math.tanh %277 : vector<8x64xf32>
    %cst_76 = arith.constant 1.000000e+00 : f32
    %279 = vector.broadcast %cst_76 : f32 to vector<8x64xf32>
    %280 = arith.subf %279, %273 : vector<8x64xf32>
    %281 = arith.mulf %280, %278 : vector<8x64xf32>
    %282 = arith.mulf %273, %248 : vector<8x64xf32>
    %283 = arith.addf %281, %282 : vector<8x64xf32>
    %284 = arith.index_cast %261 : i32 to index
    %c0_77 = arith.constant 0 : index
    %285 = vector.load %arg6[%284, %c0_77] : memref<64x128xf32, #tpu.memory_space<vmem>>, vector<8x64xf32>
    tpu.vector_store %arg6[%284, %c0_77], %283 {strides = array<i32>} : memref<64x128xf32, #tpu.memory_space<vmem>>, vector<8x64xf32>,
    %c7_i32_78 = arith.constant 7 : i32
    %286 = arith.subi %c7_i32_78, %c7_i32_71 : i32
    %c8_i32_79 = arith.constant 8 : i32
    %287 = arith.muli %286, %c8_i32_79 : i32
    %288 = tpu.assume_multiple %287, 8 : i32
    %289 = arith.index_cast %288 : i32 to index
    %c64_80 = arith.constant 64 : index
    %290 = vector.load %arg6[%289, %c64_80] : memref<64x128xf32, #tpu.memory_space<vmem>>, vector<8x64xf32>
    tpu.vector_store %arg6[%289, %c64_80], %283 {strides = array<i32>} : memref<64x128xf32, #tpu.memory_space<vmem>>, vector<8x64xf32>,
    %c8_i32_81 = arith.constant 8 : i32
    %c96 = arith.constant 96 : index
    %c0_82 = arith.constant 0 : index
    %291 = vector.load %arg1[%c96, %c0_82] : memref<288x192xbf16, #tpu.memory_space<vmem>>, vector<128x192xbf16>
    %c224 = arith.constant 224 : index
    %c0_83 = arith.constant 0 : index
    %292 = vector.load %arg1[%c224, %c0_83] : memref<288x192xbf16, #tpu.memory_space<vmem>>, vector<64x192xbf16>
    %c2 = arith.constant 2 : index
    %c0_84 = arith.constant 0 : index
    %293 = vector.load %arg2[%c2, %c0_84] : memref<4x192xf32, #tpu.memory_space<vmem>>, vector<1x192xf32>
    %c3 = arith.constant 3 : index
    %c0_85 = arith.constant 0 : index
    %294 = vector.load %arg2[%c3, %c0_85] : memref<4x192xf32, #tpu.memory_space<vmem>>, vector<1x192xf32>
    %c0_86 = arith.constant 0 : index
    %c0_87 = arith.constant 0 : index
    %295 = vector.load %arg6[%c0_86, %c0_87] : memref<64x128xf32, #tpu.memory_space<vmem>>, vector<64x128xf32>
    %296 = arith.truncf %295 : vector<64x128xf32> to vector<64x128xbf16>
    %cst_88 = arith.constant dense<0.000000e+00> : vector<64x192xf32>
    %297 = tpu.matmul %296, %291, %cst_88 {dimension_numbers = #tpu.dot_dimension_numbers<[1], [0], [0], [1], [0, 0, 1, 1], [], []>} : vector<64x128xbf16>, vector<128x192xbf16>, vector<64x192xf32> -> vector<64x192xf32>
    %298 = vector.broadcast %293 : vector<1x192xf32> to vector<64x192xf32>
    %299 = arith.addf %297, %298 : vector<64x192xf32>
    %c0_89 = arith.constant 0 : index
    %c0_90 = arith.constant 0 : index
    %300 = vector.load %arg7[%c0_89, %c0_90] : memref<64x192xf32, #tpu.memory_space<vmem>>, vector<64x192xf32>
    tpu.vector_store %arg7[%c0_89, %c0_90], %299 {strides = array<i32>} : memref<64x192xf32, #tpu.memory_space<vmem>>, vector<64x192xf32>,
    %cst_91 = arith.constant 0.000000e+00 : f32
    %301 = vector.broadcast %cst_91 : f32 to vector<8x64xf32>
    %c0_i32_92 = arith.constant 0 : i32
    %302 = arith.truncf %301 : vector<8x64xf32> to vector<8x64xbf16>
    %cst_93 = arith.constant dense<0.000000e+00> : vector<8x192xf32>
    %303 = tpu.matmul %302, %292, %cst_93 {dimension_numbers = #tpu.dot_dimension_numbers<[1], [0], [0], [1], [0, 0, 1, 1], [], []>} : vector<8x64xbf16>, vector<64x192xbf16>, vector<8x192xf32> -> vector<8x192xf32>
    %304 = vector.broadcast %294 : vector<1x192xf32> to vector<8x192xf32>
    %305 = arith.addf %303, %304 : vector<8x192xf32>
    %c8_i32_94 = arith.constant 8 : i32
    %306 = arith.muli %c0_i32_92, %c8_i32_94 : i32
    %307 = tpu.assume_multiple %306, 8 : i32
    %308 = arith.index_cast %307 : i32 to index
    %c0_95 = arith.constant 0 : index
    %309 = vector.load %arg7[%308, %c0_95] : memref<64x192xf32, #tpu.memory_space<vmem>>, vector<8x192xf32>
    %310 = vector.extract_strided_slice %309 {offsets = [0, 0], sizes = [8, 128], strides = [1, 1]} : vector<8x192xf32> to vector<8x128xf32>
    %311 = vector.extract_strided_slice %305 {offsets = [0, 0], sizes = [8, 128], strides = [1, 1]} : vector<8x192xf32> to vector<8x128xf32>
    %312 = arith.addf %310, %311 : vector<8x128xf32>
    %313 = arith.negf %312 : vector<8x128xf32>
    %314 = math.exp %313 : vector<8x128xf32>
    %cst_96 = arith.constant 1.000000e+00 : f32
    %315 = vector.broadcast %cst_96 : f32 to vector<8x128xf32>
    %316 = arith.addf %315, %314 : vector<8x128xf32>
    %317 = arith.divf %315, %316 : vector<8x128xf32>
    %318 = vector.extract_strided_slice %317 {offsets = [0, 0], sizes = [8, 64], strides = [1, 1]} : vector<8x128xf32> to vector<8x64xf32>
    %319 = vector.extract_strided_slice %317 {offsets = [0, 64], sizes = [8, 64], strides = [1, 1]} : vector<8x128xf32> to vector<8x64xf32>
    %320 = vector.extract_strided_slice %309 {offsets = [0, 128], sizes = [8, 64], strides = [1, 1]} : vector<8x192xf32> to vector<8x64xf32>
    %321 = vector.extract_strided_slice %305 {offsets = [0, 128], sizes = [8, 64], strides = [1, 1]} : vector<8x192xf32> to vector<8x64xf32>
    %322 = arith.mulf %318, %321 : vector<8x64xf32>
    %323 = arith.addf %320, %322 : vector<8x64xf32>
    %324 = math.tanh %323 : vector<8x64xf32>
    %cst_97 = arith.constant 1.000000e+00 : f32
    %325 = vector.broadcast %cst_97 : f32 to vector<8x64xf32>
    %326 = arith.subf %325, %319 : vector<8x64xf32>
    %327 = arith.mulf %326, %324 : vector<8x64xf32>
    %328 = arith.mulf %319, %301 : vector<8x64xf32>
    %329 = arith.addf %327, %328 : vector<8x64xf32>
    %330 = arith.addf %0, %329 : vector<8x64xf32>
    %c1_i32_98 = arith.constant 1 : i32
    %331 = arith.truncf %329 : vector<8x64xf32> to vector<8x64xbf16>
    %cst_99 = arith.constant dense<0.000000e+00> : vector<8x192xf32>
    %332 = tpu.matmul %331, %292, %cst_99 {dimension_numbers = #tpu.dot_dimension_numbers<[1], [0], [0], [1], [0, 0, 1, 1], [], []>} : vector<8x64xbf16>, vector<64x192xbf16>, vector<8x192xf32> -> vector<8x192xf32>
    %333 = vector.broadcast %294 : vector<1x192xf32> to vector<8x192xf32>
    %334 = arith.addf %332, %333 : vector<8x192xf32>
    %c8_i32_100 = arith.constant 8 : i32
    %335 = arith.muli %c1_i32_98, %c8_i32_100 : i32
    %336 = tpu.assume_multiple %335, 8 : i32
    %337 = arith.index_cast %336 : i32 to index
    %c0_101 = arith.constant 0 : index
    %338 = vector.load %arg7[%337, %c0_101] : memref<64x192xf32, #tpu.memory_space<vmem>>, vector<8x192xf32>
    %339 = vector.extract_strided_slice %338 {offsets = [0, 0], sizes = [8, 128], strides = [1, 1]} : vector<8x192xf32> to vector<8x128xf32>
    %340 = vector.extract_strided_slice %334 {offsets = [0, 0], sizes = [8, 128], strides = [1, 1]} : vector<8x192xf32> to vector<8x128xf32>
    %341 = arith.addf %339, %340 : vector<8x128xf32>
    %342 = arith.negf %341 : vector<8x128xf32>
    %343 = math.exp %342 : vector<8x128xf32>
    %cst_102 = arith.constant 1.000000e+00 : f32
    %344 = vector.broadcast %cst_102 : f32 to vector<8x128xf32>
    %345 = arith.addf %344, %343 : vector<8x128xf32>
    %346 = arith.divf %344, %345 : vector<8x128xf32>
    %347 = vector.extract_strided_slice %346 {offsets = [0, 0], sizes = [8, 64], strides = [1, 1]} : vector<8x128xf32> to vector<8x64xf32>
    %348 = vector.extract_strided_slice %346 {offsets = [0, 64], sizes = [8, 64], strides = [1, 1]} : vector<8x128xf32> to vector<8x64xf32>
    %349 = vector.extract_strided_slice %338 {offsets = [0, 128], sizes = [8, 64], strides = [1, 1]} : vector<8x192xf32> to vector<8x64xf32>
    %350 = vector.extract_strided_slice %334 {offsets = [0, 128], sizes = [8, 64], strides = [1, 1]} : vector<8x192xf32> to vector<8x64xf32>
    %351 = arith.mulf %347, %350 : vector<8x64xf32>
    %352 = arith.addf %349, %351 : vector<8x64xf32>
    %353 = math.tanh %352 : vector<8x64xf32>
    %cst_103 = arith.constant 1.000000e+00 : f32
    %354 = vector.broadcast %cst_103 : f32 to vector<8x64xf32>
    %355 = arith.subf %354, %348 : vector<8x64xf32>
    %356 = arith.mulf %355, %353 : vector<8x64xf32>
    %357 = arith.mulf %348, %329 : vector<8x64xf32>
    %358 = arith.addf %356, %357 : vector<8x64xf32>
    %359 = arith.addf %330, %358 : vector<8x64xf32>
    %c2_i32_104 = arith.constant 2 : i32
    %360 = arith.truncf %358 : vector<8x64xf32> to vector<8x64xbf16>
    %cst_105 = arith.constant dense<0.000000e+00> : vector<8x192xf32>
    %361 = tpu.matmul %360, %292, %cst_105 {dimension_numbers = #tpu.dot_dimension_numbers<[1], [0], [0], [1], [0, 0, 1, 1], [], []>} : vector<8x64xbf16>, vector<64x192xbf16>, vector<8x192xf32> -> vector<8x192xf32>
    %362 = vector.broadcast %294 : vector<1x192xf32> to vector<8x192xf32>
    %363 = arith.addf %361, %362 : vector<8x192xf32>
    %c8_i32_106 = arith.constant 8 : i32
    %364 = arith.muli %c2_i32_104, %c8_i32_106 : i32
    %365 = tpu.assume_multiple %364, 8 : i32
    %366 = arith.index_cast %365 : i32 to index
    %c0_107 = arith.constant 0 : index
    %367 = vector.load %arg7[%366, %c0_107] : memref<64x192xf32, #tpu.memory_space<vmem>>, vector<8x192xf32>
    %368 = vector.extract_strided_slice %367 {offsets = [0, 0], sizes = [8, 128], strides = [1, 1]} : vector<8x192xf32> to vector<8x128xf32>
    %369 = vector.extract_strided_slice %363 {offsets = [0, 0], sizes = [8, 128], strides = [1, 1]} : vector<8x192xf32> to vector<8x128xf32>
    %370 = arith.addf %368, %369 : vector<8x128xf32>
    %371 = arith.negf %370 : vector<8x128xf32>
    %372 = math.exp %371 : vector<8x128xf32>
    %cst_108 = arith.constant 1.000000e+00 : f32
    %373 = vector.broadcast %cst_108 : f32 to vector<8x128xf32>
    %374 = arith.addf %373, %372 : vector<8x128xf32>
    %375 = arith.divf %373, %374 : vector<8x128xf32>
    %376 = vector.extract_strided_slice %375 {offsets = [0, 0], sizes = [8, 64], strides = [1, 1]} : vector<8x128xf32> to vector<8x64xf32>
    %377 = vector.extract_strided_slice %375 {offsets = [0, 64], sizes = [8, 64], strides = [1, 1]} : vector<8x128xf32> to vector<8x64xf32>
    %378 = vector.extract_strided_slice %367 {offsets = [0, 128], sizes = [8, 64], strides = [1, 1]} : vector<8x192xf32> to vector<8x64xf32>
    %379 = vector.extract_strided_slice %363 {offsets = [0, 128], sizes = [8, 64], strides = [1, 1]} : vector<8x192xf32> to vector<8x64xf32>
    %380 = arith.mulf %376, %379 : vector<8x64xf32>
    %381 = arith.addf %378, %380 : vector<8x64xf32>
    %382 = math.tanh %381 : vector<8x64xf32>
    %cst_109 = arith.constant 1.000000e+00 : f32
    %383 = vector.broadcast %cst_109 : f32 to vector<8x64xf32>
    %384 = arith.subf %383, %377 : vector<8x64xf32>
    %385 = arith.mulf %384, %382 : vector<8x64xf32>
    %386 = arith.mulf %377, %358 : vector<8x64xf32>
    %387 = arith.addf %385, %386 : vector<8x64xf32>
    %388 = arith.addf %359, %387 : vector<8x64xf32>
    %c3_i32_110 = arith.constant 3 : i32
    %389 = arith.truncf %387 : vector<8x64xf32> to vector<8x64xbf16>
    %cst_111 = arith.constant dense<0.000000e+00> : vector<8x192xf32>
    %390 = tpu.matmul %389, %292, %cst_111 {dimension_numbers = #tpu.dot_dimension_numbers<[1], [0], [0], [1], [0, 0, 1, 1], [], []>} : vector<8x64xbf16>, vector<64x192xbf16>, vector<8x192xf32> -> vector<8x192xf32>
    %391 = vector.broadcast %294 : vector<1x192xf32> to vector<8x192xf32>
    %392 = arith.addf %390, %391 : vector<8x192xf32>
    %c8_i32_112 = arith.constant 8 : i32
    %393 = arith.muli %c3_i32_110, %c8_i32_112 : i32
    %394 = tpu.assume_multiple %393, 8 : i32
    %395 = arith.index_cast %394 : i32 to index
    %c0_113 = arith.constant 0 : index
    %396 = vector.load %arg7[%395, %c0_113] : memref<64x192xf32, #tpu.memory_space<vmem>>, vector<8x192xf32>
    %397 = vector.extract_strided_slice %396 {offsets = [0, 0], sizes = [8, 128], strides = [1, 1]} : vector<8x192xf32> to vector<8x128xf32>
    %398 = vector.extract_strided_slice %392 {offsets = [0, 0], sizes = [8, 128], strides = [1, 1]} : vector<8x192xf32> to vector<8x128xf32>
    %399 = arith.addf %397, %398 : vector<8x128xf32>
    %400 = arith.negf %399 : vector<8x128xf32>
    %401 = math.exp %400 : vector<8x128xf32>
    %cst_114 = arith.constant 1.000000e+00 : f32
    %402 = vector.broadcast %cst_114 : f32 to vector<8x128xf32>
    %403 = arith.addf %402, %401 : vector<8x128xf32>
    %404 = arith.divf %402, %403 : vector<8x128xf32>
    %405 = vector.extract_strided_slice %404 {offsets = [0, 0], sizes = [8, 64], strides = [1, 1]} : vector<8x128xf32> to vector<8x64xf32>
    %406 = vector.extract_strided_slice %404 {offsets = [0, 64], sizes = [8, 64], strides = [1, 1]} : vector<8x128xf32> to vector<8x64xf32>
    %407 = vector.extract_strided_slice %396 {offsets = [0, 128], sizes = [8, 64], strides = [1, 1]} : vector<8x192xf32> to vector<8x64xf32>
    %408 = vector.extract_strided_slice %392 {offsets = [0, 128], sizes = [8, 64], strides = [1, 1]} : vector<8x192xf32> to vector<8x64xf32>
    %409 = arith.mulf %405, %408 : vector<8x64xf32>
    %410 = arith.addf %407, %409 : vector<8x64xf32>
    %411 = math.tanh %410 : vector<8x64xf32>
    %cst_115 = arith.constant 1.000000e+00 : f32
    %412 = vector.broadcast %cst_115 : f32 to vector<8x64xf32>
    %413 = arith.subf %412, %406 : vector<8x64xf32>
    %414 = arith.mulf %413, %411 : vector<8x64xf32>
    %415 = arith.mulf %406, %387 : vector<8x64xf32>
    %416 = arith.addf %414, %415 : vector<8x64xf32>
    %417 = arith.addf %388, %416 : vector<8x64xf32>
    %c4_i32_116 = arith.constant 4 : i32
    %418 = arith.truncf %416 : vector<8x64xf32> to vector<8x64xbf16>
    %cst_117 = arith.constant dense<0.000000e+00> : vector<8x192xf32>
    %419 = tpu.matmul %418, %292, %cst_117 {dimension_numbers = #tpu.dot_dimension_numbers<[1], [0], [0], [1], [0, 0, 1, 1], [], []>} : vector<8x64xbf16>, vector<64x192xbf16>, vector<8x192xf32> -> vector<8x192xf32>
    %420 = vector.broadcast %294 : vector<1x192xf32> to vector<8x192xf32>
    %421 = arith.addf %419, %420 : vector<8x192xf32>
    %c8_i32_118 = arith.constant 8 : i32
    %422 = arith.muli %c4_i32_116, %c8_i32_118 : i32
    %423 = tpu.assume_multiple %422, 8 : i32
    %424 = arith.index_cast %423 : i32 to index
    %c0_119 = arith.constant 0 : index
    %425 = vector.load %arg7[%424, %c0_119] : memref<64x192xf32, #tpu.memory_space<vmem>>, vector<8x192xf32>
    %426 = vector.extract_strided_slice %425 {offsets = [0, 0], sizes = [8, 128], strides = [1, 1]} : vector<8x192xf32> to vector<8x128xf32>
    %427 = vector.extract_strided_slice %421 {offsets = [0, 0], sizes = [8, 128], strides = [1, 1]} : vector<8x192xf32> to vector<8x128xf32>
    %428 = arith.addf %426, %427 : vector<8x128xf32>
    %429 = arith.negf %428 : vector<8x128xf32>
    %430 = math.exp %429 : vector<8x128xf32>
    %cst_120 = arith.constant 1.000000e+00 : f32
    %431 = vector.broadcast %cst_120 : f32 to vector<8x128xf32>
    %432 = arith.addf %431, %430 : vector<8x128xf32>
    %433 = arith.divf %431, %432 : vector<8x128xf32>
    %434 = vector.extract_strided_slice %433 {offsets = [0, 0], sizes = [8, 64], strides = [1, 1]} : vector<8x128xf32> to vector<8x64xf32>
    %435 = vector.extract_strided_slice %433 {offsets = [0, 64], sizes = [8, 64], strides = [1, 1]} : vector<8x128xf32> to vector<8x64xf32>
    %436 = vector.extract_strided_slice %425 {offsets = [0, 128], sizes = [8, 64], strides = [1, 1]} : vector<8x192xf32> to vector<8x64xf32>
    %437 = vector.extract_strided_slice %421 {offsets = [0, 128], sizes = [8, 64], strides = [1, 1]} : vector<8x192xf32> to vector<8x64xf32>
    %438 = arith.mulf %434, %437 : vector<8x64xf32>
    %439 = arith.addf %436, %438 : vector<8x64xf32>
    %440 = math.tanh %439 : vector<8x64xf32>
    %cst_121 = arith.constant 1.000000e+00 : f32
    %441 = vector.broadcast %cst_121 : f32 to vector<8x64xf32>
    %442 = arith.subf %441, %435 : vector<8x64xf32>
    %443 = arith.mulf %442, %440 : vector<8x64xf32>
    %444 = arith.mulf %435, %416 : vector<8x64xf32>
    %445 = arith.addf %443, %444 : vector<8x64xf32>
    %446 = arith.addf %417, %445 : vector<8x64xf32>
    %c5_i32_122 = arith.constant 5 : i32
    %447 = arith.truncf %445 : vector<8x64xf32> to vector<8x64xbf16>
    %cst_123 = arith.constant dense<0.000000e+00> : vector<8x192xf32>
    %448 = tpu.matmul %447, %292, %cst_123 {dimension_numbers = #tpu.dot_dimension_numbers<[1], [0], [0], [1], [0, 0, 1, 1], [], []>} : vector<8x64xbf16>, vector<64x192xbf16>, vector<8x192xf32> -> vector<8x192xf32>
    %449 = vector.broadcast %294 : vector<1x192xf32> to vector<8x192xf32>
    %450 = arith.addf %448, %449 : vector<8x192xf32>
    %c8_i32_124 = arith.constant 8 : i32
    %451 = arith.muli %c5_i32_122, %c8_i32_124 : i32
    %452 = tpu.assume_multiple %451, 8 : i32
    %453 = arith.index_cast %452 : i32 to index
    %c0_125 = arith.constant 0 : index
    %454 = vector.load %arg7[%453, %c0_125] : memref<64x192xf32, #tpu.memory_space<vmem>>, vector<8x192xf32>
    %455 = vector.extract_strided_slice %454 {offsets = [0, 0], sizes = [8, 128], strides = [1, 1]} : vector<8x192xf32> to vector<8x128xf32>
    %456 = vector.extract_strided_slice %450 {offsets = [0, 0], sizes = [8, 128], strides = [1, 1]} : vector<8x192xf32> to vector<8x128xf32>
    %457 = arith.addf %455, %456 : vector<8x128xf32>
    %458 = arith.negf %457 : vector<8x128xf32>
    %459 = math.exp %458 : vector<8x128xf32>
    %cst_126 = arith.constant 1.000000e+00 : f32
    %460 = vector.broadcast %cst_126 : f32 to vector<8x128xf32>
    %461 = arith.addf %460, %459 : vector<8x128xf32>
    %462 = arith.divf %460, %461 : vector<8x128xf32>
    %463 = vector.extract_strided_slice %462 {offsets = [0, 0], sizes = [8, 64], strides = [1, 1]} : vector<8x128xf32> to vector<8x64xf32>
    %464 = vector.extract_strided_slice %462 {offsets = [0, 64], sizes = [8, 64], strides = [1, 1]} : vector<8x128xf32> to vector<8x64xf32>
    %465 = vector.extract_strided_slice %454 {offsets = [0, 128], sizes = [8, 64], strides = [1, 1]} : vector<8x192xf32> to vector<8x64xf32>
    %466 = vector.extract_strided_slice %450 {offsets = [0, 128], sizes = [8, 64], strides = [1, 1]} : vector<8x192xf32> to vector<8x64xf32>
    %467 = arith.mulf %463, %466 : vector<8x64xf32>
    %468 = arith.addf %465, %467 : vector<8x64xf32>
    %469 = math.tanh %468 : vector<8x64xf32>
    %cst_127 = arith.constant 1.000000e+00 : f32
    %470 = vector.broadcast %cst_127 : f32 to vector<8x64xf32>
    %471 = arith.subf %470, %464 : vector<8x64xf32>
    %472 = arith.mulf %471, %469 : vector<8x64xf32>
    %473 = arith.mulf %464, %445 : vector<8x64xf32>
    %474 = arith.addf %472, %473 : vector<8x64xf32>
    %475 = arith.addf %446, %474 : vector<8x64xf32>
    %c6_i32_128 = arith.constant 6 : i32
    %476 = arith.truncf %474 : vector<8x64xf32> to vector<8x64xbf16>
    %cst_129 = arith.constant dense<0.000000e+00> : vector<8x192xf32>
    %477 = tpu.matmul %476, %292, %cst_129 {dimension_numbers = #tpu.dot_dimension_numbers<[1], [0], [0], [1], [0, 0, 1, 1], [], []>} : vector<8x64xbf16>, vector<64x192xbf16>, vector<8x192xf32> -> vector<8x192xf32>
    %478 = vector.broadcast %294 : vector<1x192xf32> to vector<8x192xf32>
    %479 = arith.addf %477, %478 : vector<8x192xf32>
    %c8_i32_130 = arith.constant 8 : i32
    %480 = arith.muli %c6_i32_128, %c8_i32_130 : i32
    %481 = tpu.assume_multiple %480, 8 : i32
    %482 = arith.index_cast %481 : i32 to index
    %c0_131 = arith.constant 0 : index
    %483 = vector.load %arg7[%482, %c0_131] : memref<64x192xf32, #tpu.memory_space<vmem>>, vector<8x192xf32>
    %484 = vector.extract_strided_slice %483 {offsets = [0, 0], sizes = [8, 128], strides = [1, 1]} : vector<8x192xf32> to vector<8x128xf32>
    %485 = vector.extract_strided_slice %479 {offsets = [0, 0], sizes = [8, 128], strides = [1, 1]} : vector<8x192xf32> to vector<8x128xf32>
    %486 = arith.addf %484, %485 : vector<8x128xf32>
    %487 = arith.negf %486 : vector<8x128xf32>
    %488 = math.exp %487 : vector<8x128xf32>
    %cst_132 = arith.constant 1.000000e+00 : f32
    %489 = vector.broadcast %cst_132 : f32 to vector<8x128xf32>
    %490 = arith.addf %489, %488 : vector<8x128xf32>
    %491 = arith.divf %489, %490 : vector<8x128xf32>
    %492 = vector.extract_strided_slice %491 {offsets = [0, 0], sizes = [8, 64], strides = [1, 1]} : vector<8x128xf32> to vector<8x64xf32>
    %493 = vector.extract_strided_slice %491 {offsets = [0, 64], sizes = [8, 64], strides = [1, 1]} : vector<8x128xf32> to vector<8x64xf32>
    %494 = vector.extract_strided_slice %483 {offsets = [0, 128], sizes = [8, 64], strides = [1, 1]} : vector<8x192xf32> to vector<8x64xf32>
    %495 = vector.extract_strided_slice %479 {offsets = [0, 128], sizes = [8, 64], strides = [1, 1]} : vector<8x192xf32> to vector<8x64xf32>
    %496 = arith.mulf %492, %495 : vector<8x64xf32>
    %497 = arith.addf %494, %496 : vector<8x64xf32>
    %498 = math.tanh %497 : vector<8x64xf32>
    %cst_133 = arith.constant 1.000000e+00 : f32
    %499 = vector.broadcast %cst_133 : f32 to vector<8x64xf32>
    %500 = arith.subf %499, %493 : vector<8x64xf32>
    %501 = arith.mulf %500, %498 : vector<8x64xf32>
    %502 = arith.mulf %493, %474 : vector<8x64xf32>
    %503 = arith.addf %501, %502 : vector<8x64xf32>
    %504 = arith.addf %475, %503 : vector<8x64xf32>
    %c7_i32_134 = arith.constant 7 : i32
    %505 = arith.truncf %503 : vector<8x64xf32> to vector<8x64xbf16>
    %cst_135 = arith.constant dense<0.000000e+00> : vector<8x192xf32>
    %506 = tpu.matmul %505, %292, %cst_135 {dimension_numbers = #tpu.dot_dimension_numbers<[1], [0], [0], [1], [0, 0, 1, 1], [], []>} : vector<8x64xbf16>, vector<64x192xbf16>, vector<8x192xf32> -> vector<8x192xf32>
    %507 = vector.broadcast %294 : vector<1x192xf32> to vector<8x192xf32>
    %508 = arith.addf %506, %507 : vector<8x192xf32>
    %c8_i32_136 = arith.constant 8 : i32
    %509 = arith.muli %c7_i32_134, %c8_i32_136 : i32
    %510 = tpu.assume_multiple %509, 8 : i32
    %511 = arith.index_cast %510 : i32 to index
    %c0_137 = arith.constant 0 : index
    %512 = vector.load %arg7[%511, %c0_137] : memref<64x192xf32, #tpu.memory_space<vmem>>, vector<8x192xf32>
    %513 = vector.extract_strided_slice %512 {offsets = [0, 0], sizes = [8, 128], strides = [1, 1]} : vector<8x192xf32> to vector<8x128xf32>
    %514 = vector.extract_strided_slice %508 {offsets = [0, 0], sizes = [8, 128], strides = [1, 1]} : vector<8x192xf32> to vector<8x128xf32>
    %515 = arith.addf %513, %514 : vector<8x128xf32>
    %516 = arith.negf %515 : vector<8x128xf32>
    %517 = math.exp %516 : vector<8x128xf32>
    %cst_138 = arith.constant 1.000000e+00 : f32
    %518 = vector.broadcast %cst_138 : f32 to vector<8x128xf32>
    %519 = arith.addf %518, %517 : vector<8x128xf32>
    %520 = arith.divf %518, %519 : vector<8x128xf32>
    %521 = vector.extract_strided_slice %520 {offsets = [0, 0], sizes = [8, 64], strides = [1, 1]} : vector<8x128xf32> to vector<8x64xf32>
    %522 = vector.extract_strided_slice %520 {offsets = [0, 64], sizes = [8, 64], strides = [1, 1]} : vector<8x128xf32> to vector<8x64xf32>
    %523 = vector.extract_strided_slice %512 {offsets = [0, 128], sizes = [8, 64], strides = [1, 1]} : vector<8x192xf32> to vector<8x64xf32>
    %524 = vector.extract_strided_slice %508 {offsets = [0, 128], sizes = [8, 64], strides = [1, 1]} : vector<8x192xf32> to vector<8x64xf32>
    %525 = arith.mulf %521, %524 : vector<8x64xf32>
    %526 = arith.addf %523, %525 : vector<8x64xf32>
    %527 = math.tanh %526 : vector<8x64xf32>
    %cst_139 = arith.constant 1.000000e+00 : f32
    %528 = vector.broadcast %cst_139 : f32 to vector<8x64xf32>
    %529 = arith.subf %528, %522 : vector<8x64xf32>
    %530 = arith.mulf %529, %527 : vector<8x64xf32>
    %531 = arith.mulf %522, %503 : vector<8x64xf32>
    %532 = arith.addf %530, %531 : vector<8x64xf32>
    %533 = arith.addf %504, %532 : vector<8x64xf32>
    %c8_i32_140 = arith.constant 8 : i32
    %cst_141 = arith.constant 1.250000e-01 : f32
    %534 = vector.broadcast %cst_141 : f32 to vector<8x64xf32>
    %535 = arith.mulf %533, %534 : vector<8x64xf32>
    %c0_142 = arith.constant 0 : index
    %c0_143 = arith.constant 0 : index
    %536 = vector.load %arg3[%c0_142, %c0_143] : memref<320x128xbf16, #tpu.memory_space<vmem>>, vector<64x128xbf16>
    %c64_144 = arith.constant 64 : index
    %c0_145 = arith.constant 0 : index
    %537 = vector.load %arg3[%c64_144, %c0_145] : memref<320x128xbf16, #tpu.memory_space<vmem>>, vector<128x128xbf16>
    %c192 = arith.constant 192 : index
    %c0_146 = arith.constant 0 : index
    %538 = vector.load %arg3[%c192, %c0_146] : memref<320x128xbf16, #tpu.memory_space<vmem>>, vector<128x128xbf16>
    %539 = arith.truncf %535 : vector<8x64xf32> to vector<8x64xbf16>
    %cst_147 = arith.constant dense<0.000000e+00> : vector<8x128xf32>
    %540 = tpu.matmul %539, %536, %cst_147 {dimension_numbers = #tpu.dot_dimension_numbers<[1], [0], [0], [1], [0, 0, 1, 1], [], []>} : vector<8x64xbf16>, vector<64x128xbf16>, vector<8x128xf32> -> vector<8x128xf32>
    %c0_148 = arith.constant 0 : index
    %c0_149 = arith.constant 0 : index
    %541 = vector.load %arg4[%c0_148, %c0_149] : memref<3x128xf32, #tpu.memory_space<vmem>>, vector<1x128xf32>
    %542 = vector.broadcast %541 : vector<1x128xf32> to vector<8x128xf32>
    %543 = arith.addf %540, %542 : vector<8x128xf32>
    %cst_150 = arith.constant 0.000000e+00 : f32
    %544 = vector.broadcast %cst_150 : f32 to vector<8x128xf32>
    %545 = arith.cmpf ogt, %543, %544 : vector<8x128xf32>
    %cst_151 = arith.constant 0.00999999977 : f32
    %546 = vector.broadcast %cst_151 : f32 to vector<8x128xf32>
    %547 = arith.mulf %546, %543 : vector<8x128xf32>
    %548 = arith.select %545, %543, %547 : vector<8x128xi1>, vector<8x128xf32>
    %549 = arith.truncf %548 : vector<8x128xf32> to vector<8x128xbf16>
    %cst_152 = arith.constant dense<0.000000e+00> : vector<8x128xf32>
    %550 = tpu.matmul %549, %537, %cst_152 {dimension_numbers = #tpu.dot_dimension_numbers<[1], [0], [0], [1], [0, 0, 1, 1], [], []>} : vector<8x128xbf16>, vector<128x128xbf16>, vector<8x128xf32> -> vector<8x128xf32>
    %c1_153 = arith.constant 1 : index
    %c0_154 = arith.constant 0 : index
    %551 = vector.load %arg4[%c1_153, %c0_154] : memref<3x128xf32, #tpu.memory_space<vmem>>, vector<1x128xf32>
    %552 = vector.broadcast %551 : vector<1x128xf32> to vector<8x128xf32>
    %553 = arith.addf %550, %552 : vector<8x128xf32>
    %cst_155 = arith.constant 0.000000e+00 : f32
    %554 = vector.broadcast %cst_155 : f32 to vector<8x128xf32>
    %555 = arith.cmpf ogt, %553, %554 : vector<8x128xf32>
    %cst_156 = arith.constant 0.00999999977 : f32
    %556 = vector.broadcast %cst_156 : f32 to vector<8x128xf32>
    %557 = arith.mulf %556, %553 : vector<8x128xf32>
    %558 = arith.select %555, %553, %557 : vector<8x128xi1>, vector<8x128xf32>
    %559 = arith.truncf %558 : vector<8x128xf32> to vector<8x128xbf16>
    %cst_157 = arith.constant dense<0.000000e+00> : vector<8x128xf32>
    %560 = tpu.matmul %559, %538, %cst_157 {dimension_numbers = #tpu.dot_dimension_numbers<[1], [0], [0], [1], [0, 0, 1, 1], [], []>} : vector<8x128xbf16>, vector<128x128xbf16>, vector<8x128xf32> -> vector<8x128xf32>
    %c2_158 = arith.constant 2 : index
    %c0_159 = arith.constant 0 : index
    %561 = vector.load %arg4[%c2_158, %c0_159] : memref<3x128xf32, #tpu.memory_space<vmem>>, vector<1x128xf32>
    %562 = vector.broadcast %561 : vector<1x128xf32> to vector<8x128xf32>
    %563 = arith.addf %560, %562 : vector<8x128xf32>
    %c0_160 = arith.constant 0 : index
    %c0_161 = arith.constant 0 : index
    %564 = vector.load %arg5[%c0_160, %c0_161] : memref<8x128xf32, #tpu.memory_space<vmem>>, vector<8x128xf32>
    tpu.vector_store %arg5[%c0_160, %c0_161], %563 {strides = array<i32>} : memref<8x128xf32, #tpu.memory_space<vmem>>, vector<8x128xf32>,
    return
  }
}

</mosaic_0001>

<bundles_post_ra>
// kernel: bigru_model_forward.1
= control target key start
LH: loop header
LB: loop body
LE: loop exit
PB: predicated region body
PF: predicated region fallthrough
CT: control target
= control target key end

     0   :  { %10 = vsyncpa [#allocation5], 0  ;;  %s2404_s18 = smov [#allocation4]   ;;  %s3059_s0 = inlined_call_operand.vmem [shape: bf16[64,32], index: 0, kind: input, shape index: {}]   ;;  %s3060_s1 = inlined_call_operand.hbm [shape: bf16[288,192], index: 1, kind: input, shape index: {}]   ;;  %s3061_s2 = inlined_call_operand.vmem [shape: f32[4,192], index: 2, kind: input, shape index: {}]   ;;  %s3062_s3 = inlined_call_operand.vmem [shape: bf16[320,128], index: 3, kind: input, shape index: {}]   ;;  %s3063_s4 = inlined_call_operand.vmem [shape: f32[3,128], index: 4, kind: input, shape index: {}]   ;;  %s3064_s5 = inlined_call_operand.vmem [shape: f32[8,128], index: 5, kind: output, shape index: {}]  }
   0x1   :  { %s18_s19 = sshll.u32 %s2404_s18, 4  ;;  %s2380_s22 = scalar_lea.hbm %s3060_s1, 4608  ;;  %s19_s19 = int_to_ptr.vmem [resolvable:$true] %s18_s19 }
   0x2   :  { %p2381_p0 = scmp.ne.s32.totalorder %s3060_s1, %s2380_s22  ;;  %p2384_p1 = scmp.lt.u32.totalorder %s2380_s22, %s3060_s1 }
   0x4   :  { %p2386_p2 = pnand %p2384_p1, %p2381_p0 }
   0x6   :  { %2389 = shalt.err (!%p2386_p2)
}
   0x7   :  { %s2390_s27 = scalar_lea.vmem %s19_s19, 4608  ;;  %p2395_p4 = scmp.lt.s32.totalorder %s19_s19, %s19_s19 }
   0x8   :  { %p2391_p3 = scmp.ne.s32.totalorder %s19_s19, %s2390_s27  ;;  %p2396_p5 = scmp.lt.s32.totalorder %s2390_s27, %s2390_s27 }
   0xa   :  { %p2397_p6 = por %p2396_p5, %p2395_p4 }
   0xc   :  { %p2398_p7 = pnand %p2397_p6, %p2391_p3 }
   0xe   :  { %2401 = shalt.err (!%p2398_p7)
}
   0xf   :  { %s2405_s28 = smov 128   ;;  %s2406_s29 = smov 8  }
  0x10   :  { %24 = dma.hbm_to_vmem [thread:$0]  %s3060_s1, 4608, %s19_s19, [#allocation5], %s2405_s28, %s2405_s28, %s2406_s29  }
  0x11   :  { %2402 = dma.done.wait [#allocation5], 4608  }
  0x12   :  { %2403 = vsyncadd [#allocation5], 4294962688  ;;  %v2407_v0 = vmov 0   ;;  %v2206_v1 = vld [vmem:[#allocation4 + $0x4] ss:$8 sps:$4 sm:$0xff]   ;;  %vm109_vm0 = vcmask 261120   ;;  %v59_v14 = vlaneseq }
  0x13   :  { %154 = vmatprep.mubr.bf16.mxu0 %v2407_v0  ;;  %298 = vmatprep.mubr.bf16.mxu1 %v2407_v0  ;;  %v2455_v2 = vld [vmem:[#allocation4 + $0x24] ss:$8 sps:$4 sm:$0xff]   ;;  %v2210_v3 = vld [vmem:[#allocation4] ss:$8 sps:$4 sm:$0xff]   ;;  %v2212_v5 = vld [vmem:[#allocation4 + $0x14] ss:$8 sps:$4 sm:$0xff]  }
  0x14   :  { %122 = vmatprep.subr.bf16.mxu0 %v2206_v1  ;;  %v2457_v4 = vld [vmem:[#allocation4 + $0x20] ss:$8 sps:$4 sm:$0xff]   ;;  %266 = vmatprep.subr.bf16.mxu1 %v2455_v2  ;;  %v2461_v6 = vld [vmem:[#allocation4 + $0x34] ss:$8 sps:$4 sm:$0xff]   ;;  %v2216_v7 = vld [vmem:[#allocation4 + $0x10] ss:$8 sps:$4 sm:$0xff]  }
  0x15   :  { %123 = vmatpush1.bf16.msra.mxu0 %v2210_v3  ;;  %267 = vmatpush1.bf16.msra.mxu1 %v2457_v4  ;;  %v2463_v8 = vld [vmem:[#allocation4 + $0x30] ss:$8 sps:$4 sm:$0xff]   ;;  %v2218_v9 = vld [vmem:[%s3059_s0] sm:$0xff]   ;;  %v2475_v12 = vld [vmem:[#allocation4 + $0x54] ss:$8 sps:$4 sm:$0xff]   ;;  %v60_v15 = vshrl.u32 %v59_v14, 7 }
  0x16   :  { %124 = vmatprep.subr.bf16.mxu0 %v2212_v5  ;;  %268 = vmatprep.subr.bf16.mxu1 %v2461_v6  ;;  %v2469_v10 = vld [vmem:[#allocation4 + $0x44] ss:$8 sps:$4 sm:$0xff]   ;;  %v2472_v11 = vld [vmem:[#allocation4 + $0x40] ss:$8 sps:$4 sm:$0xff]   ;;  %v2478_v13 = vld [vmem:[#allocation4 + $0x50] ss:$8 sps:$4 sm:$0xff]  }
  0x17   :  { %v2504_v16 = vsub.s32 1, %v60_v15  ;;  %v47_v17 = vld [vmem:[%s3061_s2] ss:$4 sm:$0x3]  ;;  %v2512_v19 = vsub.s32 0, %v60_v15  ;;  %vm196_vm1 = vcmask 523264  }
  0x18   :  { %v2023_v24 = vld [vmem:[%s3061_s2 + $0x1] ss:$4 sm:$0x3]  ;;  %s2408_s12 = smov 64   ;;  %vm336_vm2 = vcmask 1048064   ;;  %v2226_v15 = vld [vmem:[%s3059_s0 + $0x10] sm:$0xff]  }
  0x19   :  { %125 = vmatpush1.bf16.msra.mxu0 %v2216_v7  ;;  %269 = vmatpush1.bf16.msra.mxu1 %v2463_v8  ;;  %v2510_v18 = vrot.slane %v47_v17, %v2504_v16  ;;  %v2519_v25 = vrot.slane %v47_v17, %v2512_v19  ;;  %v2524_v28 = vrot.slane %v2023_v24, %v2512_v19  ;;  %v2227_v17 = vld [vmem:[%s3059_s0 + $0x18] sm:$0xff]   ;;  %vm2410_vm3 = vmmov 0  }
  0x1a   :  { %270 = vmatprep.subr.bf16.mxu1 %v2469_v10  ;;  %424 = vmatprep.subr.bf16.mxu0 %v2455_v2  ;;  %v2530_v39 = vrot.slane %v2023_v24, %v2504_v16 }
  0x1c   :  { %2032 = vmatmul.mubr.msk.bf16.vlgmr.msra.gmra.mrb[0].mxu0 %vm109_vm0, %v2218_v9  ;;  %v2225_v9 = vld [vmem:[%s3059_s0 + $0x8] sm:$0xff]  }
  0x1d   :  { %271 = vmatpush1.bf16.msra.mxu1 %v2472_v11  ;;  %425 = vmatpush1.bf16.msra.mxu0 %v2457_v4 }
  0x1e   :  { %272 = vmatprep.subr.bf16.mxu1 %v2475_v12  ;;  %164 = vmatprep.mubr.bf16.mxu0 %v2407_v0 }
  0x1f   :  { %426 = vmatprep.subr.bf16.mxu0 %v2461_v6 }
  0x21   :  { %273 = vmatpush1.bf16.msra.mxu1 %v2478_v13  ;;  %427 = vmatpush1.bf16.msra.mxu0 %v2463_v8 }
  0x22   :  { %345 = vmatprep.subr.bf16.mxu1 %v2455_v2  ;;  %428 = vmatprep.subr.bf16.mxu0 %v2469_v10 }
  0x24   :  { %299 = vmatmul.mubr.bf16.vlgmr.msra.gmra.mrb[0].mxu1 %v2407_v0  ;;  %2033 = vmatmul.mubr.msk.bf16.gmra.mrb[4].mxu0 %vm109_vm0, %v2225_v9 }
  0x25   :  { %346 = vmatpush1.bf16.msra.mxu1 %v2457_v4  ;;  %377 = vmatprep.mubr.bf16.mxu1 %v2407_v0 }
  0x26   :  { %347 = vmatprep.subr.bf16.mxu1 %v2461_v6  ;;  %429 = vmatpush1.bf16.msra.mxu0 %v2472_v11 }
  0x27   :  { %430 = vmatprep.subr.bf16.mxu0 %v2475_v12  ;;  %174 = vmatprep.mubr.bf16.mxu0 %v2407_v0 }
  0x29   :  { %348 = vmatpush1.bf16.msra.mxu1 %v2463_v8 }
  0x2a   :  { %349 = vmatprep.subr.bf16.mxu1 %v2469_v10  ;;  %431 = vmatpush1.bf16.msra.mxu0 %v2478_v13 }
  0x2b   :  { %582 = vmatprep.subr.bf16.mxu0 %v2455_v2 }
  0x2c   :  { %2034 = vmatmul.mubr.msk.bf16.gmra.mrb[8].mxu0 %vm109_vm0, %v2226_v15 }
  0x2d   :  { %350 = vmatpush1.bf16.msra.mxu1 %v2472_v11  ;;  %184 = vmatprep.mubr.bf16.mxu0 %v2407_v0 }
  0x2e   :  { %351 = vmatprep.subr.bf16.mxu1 %v2475_v12 }
  0x31   :  { %352 = vmatpush1.bf16.msra.mxu1 %v2478_v13 }
  0x32   :  { %503 = vmatprep.subr.bf16.mxu1 %v2455_v2 }
  0x34   :  { %2035 = vmatmul.mubr.msk.bf16.gmra.mrb[12].mxu0 %vm109_vm0, %v2227_v17 }
  0x35   :  { %456 = vmatprep.mubr.bf16.mxu0 %v2407_v0 }
  0xef   :  { %v156_v20 = vpop.f32.mrb[0].mxu0 }
  0xf0   :  { %v158_v21 = vpop.f32.mrb[1].mxu0  ;;  %v157_v29 = vadd.f32 %v156_v20, %v2519_v25 }
  0xf1   :  { %v159_v22 = vadd.f32 %v158_v21, %v2510_v18  ;;  %v160_v23 = vpop.f32.mrb[2].mxu0 }
  0xf2   :  { %v162_v26 = vpop.f32.mrb[3].mxu0  ;;  %v161_v54 = vadd.f32 %v160_v23, %v2519_v25 }
  0xf3   :  { %197 = vst.msk [vmem:[#allocation3 + $0x8] sm:$0xff] %vm196_vm1, %v159_v22  ;;  %v163_v27 = vadd.f32 %v162_v26, %v2510_v18 }
  0xf5   :  { %199 = vst.msk [vmem:[#allocation3 + $0x18] sm:$0xff] %vm196_vm1, %v163_v27 }
  0xf7   :  { %v300_v30 = vpop.f32.mrb[0].mxu1  ;;  %v166_v27 = vpop.f32.mrb[4].mxu0 }
  0xf8   :  { %v301_v31 = vadd.f32 %v300_v30, %v2524_v28  ;;  %v302_v32 = vpop.f32.mrb[1].mxu1 }
  0xf9   :  { %v304_v33 = vpop.f32.mrb[2].mxu1  ;;  %v303_v40 = vadd.f32 %v302_v32, %v2530_v39 }
  0xfa   :  { %v312_v34 = vadd.f32 %v301_v31, %v157_v29  ;;  %v305_v35 = vpop.f32.mrb[3].mxu1  ;;  %v311_v43 = vld [vmem:[#allocation3 + $0x8] sm:$0xff]  ;;  %v168_v29 = vpop.f32.mrb[5].mxu0 }
  0xfb   :  { %v169_v30 = vadd.f32 %v168_v29, %v2510_v18  ;;  %v2579_v31 = vpop.f32.mrb[6].mxu0 }
  0xfc   :  { %v2044_v36 = vmul.f32 -1.442695, %v312_v34  ;;  %v390_v5 = vld [vmem:[#allocation3 + $0x18] sm:$0xff]  ;;  %v172_v32 = vpop.f32.mrb[7].mxu0 }
  0xfd   :  { %201 = vst.msk [vmem:[#allocation3 + $0x28] sm:$0xff] %vm196_vm1, %v169_v30  ;;  %v173_v33 = vadd.f32 %v172_v32, %v2510_v18 }
  0xfe   :  { %2284 = vpow2.f32 %v2044_v36 }
  0xff   :  { %203 = vst.msk [vmem:[#allocation3 + $0x38] sm:$0xff] %vm196_vm1, %v173_v33  ;;  %v2584_v34 = vpop.f32.mrb[8].mxu0 }
 0x100   :  { %v178_v35 = vpop.f32.mrb[9].mxu0 }
 0x101   :  { %v179_v36 = vadd.f32 %v178_v35, %v2510_v18 }
 0x103   :  { %205 = vst.msk [vmem:[#allocation3 + $0x48] sm:$0xff] %vm196_vm1, %v179_v36 }
 0x108   :  { %v2285_v37 = vpop.eup %2284 }
 0x109   :  { %v316_v38 = vadd.f32 1.0, %v2285_v37  ;;  %v2587_v37 = vpop.f32.mrb[10].mxu0 }
 0x10b   :  { %2286 = vrcp.f32 %v316_v38  ;;  %v182_v38 = vpop.f32.mrb[11].mxu0 }
 0x115   :  { %v2287_v41 = vpop.eup %2286 }
 0x116   :  { %v319_v42 = vmul.f32 %v2287_v41, %v303_v40  ;;  %v322_v46 = vsub.f32 1.0, %v2287_v41  ;;  %v328_v48 = vmul.f32 0.0, %v2287_v41  ;;  %v183_v40 = vadd.f32 %v182_v38, %v2510_v18  ;;  %v2592_v41 = vpop.f32.mrb[12].mxu0 }
 0x118   :  { %v320_v44 = vadd.f32 %v319_v42, %v311_v43  ;;  %207 = vst.msk [vmem:[#allocation3 + $0x58] sm:$0xff] %vm196_vm1, %v183_v40  ;;  %v188_v42 = vpop.f32.mrb[13].mxu0 }
 0x119   :  { %v189_v43 = vadd.f32 %v188_v42, %v2510_v18 }
 0x11a   :  { %2288 = vtanh.f32 %v320_v44  ;;  %v2595_v44 = vpop.f32.mrb[14].mxu0 }
 0x11b   :  { %209 = vst.msk [vmem:[#allocation3 + $0x68] sm:$0xff] %vm196_vm1, %v189_v43 }
 0x124   :  { %v2289_v45 = vpop.eup %2288 }
 0x125   :  { %324 = vrot.lane.b32.xlu0 %v2289_v45, %s2408_s12  ;;  %v192_v45 = vpop.f32.mrb[15].mxu0 }
 0x197   :  { %v325_v47 = vpop.permute.xlu0 %324 }
 0x198   :  { %v327_v49 = vmul.f32 %v325_v47, %v322_v46  ;;  %v193_v46 = vadd.f32 %v192_v45, %v2510_v18 }
 0x19a   :  { %v2534_v50 = vadd.f32 %v328_v48, %v327_v49  ;;  %211 = vst.msk [vmem:[#allocation3 + $0x78] sm:$0xff] %vm196_vm1, %v193_v46  ;;  %v167_v48 = vadd.f32 %v166_v27, %v2519_v25 }
 0x19c   :  { %v338_v51 = vpack.c.bf16 %v2534_v50, %v2534_v50  ;;  %337 = vst.msk [vmem:[#allocation2 + $0x38] sm:$0xff] %vm336_vm2, %v2534_v50 }
 0x19e   :  { %340 = vrot.lane.b32.xlu0 %v338_v51, %s2408_s12 }
 0x210   :  { %v341_v52 = vpop.permute.xlu0 %340 }
 0x211   :  { %2045 = vmatmul.mubr.msk.bf16.vlgmr.msra.gmra.mrb[4].mxu1 %vm196_vm1, %v341_v52 }
 0x212   :  { %504 = vmatpush1.bf16.msra.mxu1 %v2457_v4  ;;  %535 = vmatprep.mubr.bf16.mxu1 %v2407_v0 }
 0x213   :  { %505 = vmatprep.subr.bf16.mxu1 %v2461_v6 }
 0x216   :  { %506 = vmatpush1.bf16.msra.mxu1 %v2463_v8 }
 0x217   :  { %507 = vmatprep.subr.bf16.mxu1 %v2469_v10 }
 0x21a   :  { %508 = vmatpush1.bf16.msra.mxu1 %v2472_v11 }
 0x21b   :  { %509 = vmatprep.subr.bf16.mxu1 %v2475_v12 }
 0x21e   :  { %510 = vmatpush1.bf16.msra.mxu1 %v2478_v13 }
 0x21f   :  { %659 = vmatprep.subr.bf16.mxu1 %v2455_v2 }
 0x2e4   :  { %v379_v53 = vpop.f32.mrb[4].mxu1 }
 0x2e5   :  { %v380_v55 = vadd.f32 %v379_v53, %v2524_v28  ;;  %v381_v56 = vpop.f32.mrb[5].mxu1 }
 0x2e6   :  { %v383_v57 = vpop.f32.mrb[6].mxu1  ;;  %v382_v63 = vadd.f32 %v381_v56, %v2530_v39 }
 0x2e7   :  { %v391_v58 = vadd.f32 %v380_v55, %v161_v54  ;;  %v384_v59 = vpop.f32.mrb[7].mxu1 }
 0x2e9   :  { %v2046_v60 = vmul.f32 -1.442695, %v391_v58 }
 0x2eb   :  { %2290 = vpow2.f32 %v2046_v60 }
 0x2f5   :  { %v2291_v61 = vpop.eup %2290 }
 0x2f6   :  { %v395_v62 = vadd.f32 1.0, %v2291_v61  ;;  %v469_v61 = vld [vmem:[#allocation3 + $0x28] sm:$0xff] }
 0x2f8   :  { %2292 = vrcp.f32 %v395_v62 }
 0x302   :  { %v2293_v1 = vpop.eup %2292 }
 0x303   :  { %v398_v3 = vmul.f32 %v2293_v1, %v382_v63  ;;  %v401_v20 = vsub.f32 1.0, %v2293_v1  ;;  %v407_v22 = vmul.f32 %v2293_v1, %v2534_v50 }
 0x305   :  { %v399_v7 = vadd.f32 %v398_v3, %v390_v5 }
 0x307   :  { %2294 = vtanh.f32 %v399_v7 }
 0x311   :  { %v2295_v14 = vpop.eup %2294 }
 0x312   :  { %403 = vrot.lane.b32.xlu1 %v2295_v14, %s2408_s12 }
 0x384   :  { %v404_v21 = vpop.permute.xlu1 %403 }
 0x385   :  { %v406_v23 = vmul.f32 %v404_v21, %v401_v20  ;;  %v171_v20 = vadd.f32 %v2579_v31, %v2519_v25 }
 0x387   :  { %v2571_v24 = vadd.f32 %v407_v22, %v406_v23 }
 0x389   :  { %v417_v26 = vpack.c.bf16 %v2571_v24, %v2571_v24  ;;  %416 = vst.msk [vmem:[#allocation2 + $0x30] sm:$0xff] %vm336_vm2, %v2571_v24 }
 0x38b   :  { %419 = vrot.lane.b32.xlu1 %v417_v26, %s2408_s12 }
 0x3fd   :  { %v420_v47 = vpop.permute.xlu1 %419 }
 0x3fe   :  { %2047 = vmatmul.mubr.msk.bf16.vlgmr.msra.gmra.mrb[16].mxu0 %vm196_vm1, %v420_v47 }
 0x3ff   :  { %583 = vmatpush1.bf16.msra.mxu0 %v2457_v4  ;;  %614 = vmatprep.mubr.bf16.mxu0 %v2407_v0 }
 0x400   :  { %584 = vmatprep.subr.bf16.mxu0 %v2461_v6 }
 0x403   :  { %585 = vmatpush1.bf16.msra.mxu0 %v2463_v8 }
 0x404   :  { %586 = vmatprep.subr.bf16.mxu0 %v2469_v10 }
 0x407   :  { %587 = vmatpush1.bf16.msra.mxu0 %v2472_v11 }
 0x408   :  { %588 = vmatprep.subr.bf16.mxu0 %v2475_v12 }
 0x40b   :  { %589 = vmatpush1.bf16.msra.mxu0 %v2478_v13 }
 0x40c   :  { %736 = vmatprep.subr.bf16.mxu0 %v2455_v2 }
 0x4d1   :  { %v458_v18 = vpop.f32.mrb[16].mxu0 }
 0x4d2   :  { %v459_v49 = vadd.f32 %v458_v18, %v2524_v28  ;;  %v460_v51 = vpop.f32.mrb[17].mxu0 }
 0x4d3   :  { %v462_v52 = vpop.f32.mrb[18].mxu0  ;;  %v461_v58 = vadd.f32 %v460_v51, %v2530_v39 }
 0x4d4   :  { %v470_v53 = vadd.f32 %v459_v49, %v167_v48  ;;  %v463_v54 = vpop.f32.mrb[19].mxu0  ;;  %v177_v49 = vadd.f32 %v2584_v34, %v2519_v25 }
 0x4d6   :  { %v2048_v55 = vmul.f32 -1.442695, %v470_v53 }
 0x4d8   :  { %2296 = vpow2.f32 %v2048_v55 }
 0x4e2   :  { %v2297_v56 = vpop.eup %2296 }
 0x4e3   :  { %v474_v57 = vadd.f32 1.0, %v2297_v56 }
 0x4e5   :  { %2298 = vrcp.f32 %v474_v57 }
 0x4ef   :  { %v2299_v59 = vpop.eup %2298 }
 0x4f0   :  { %v477_v60 = vmul.f32 %v2299_v59, %v461_v58  ;;  %v480_v1 = vsub.f32 1.0, %v2299_v59  ;;  %v486_v5 = vmul.f32 %v2299_v59, %v2571_v24 }
 0x4f2   :  { %v478_v62 = vadd.f32 %v477_v60, %v469_v61 }
 0x4f4   :  { %2300 = vtanh.f32 %v478_v62  ;;  %v627_v62 = vld [vmem:[#allocation3 + $0x48] sm:$0xff] }
 0x4fe   :  { %v2301_v63 = vpop.eup %2300 }
 0x4ff   :  { %482 = vrot.lane.b32.xlu0 %v2301_v63, %s2408_s12 }
 0x571   :  { %v483_v3 = vpop.permute.xlu0 %482 }
 0x572   :  { %v485_v7 = vmul.f32 %v483_v3, %v480_v1 }
 0x574   :  { %v2615_v9 = vadd.f32 %v486_v5, %v485_v7 }
 0x576   :  { %v496_v14 = vpack.c.bf16 %v2615_v9, %v2615_v9  ;;  %495 = vst.msk [vmem:[#allocation2 + $0x28] sm:$0xff] %vm336_vm2, %v2615_v9 }
 0x578   :  { %498 = vrot.lane.b32.xlu1 %v496_v14, %s2408_s12 }
 0x5ea   :  { %v499_v15 = vpop.permute.xlu1 %498 }
 0x5eb   :  { %2049 = vmatmul.mubr.msk.bf16.vlgmr.msra.gmra.mrb[8].mxu1 %vm196_vm1, %v499_v15 }
 0x5ec   :  { %660 = vmatpush1.bf16.msra.mxu1 %v2457_v4  ;;  %691 = vmatprep.mubr.bf16.mxu1 %v2407_v0 }
 0x5ed   :  { %661 = vmatprep.subr.bf16.mxu1 %v2461_v6 }
 0x5f0   :  { %662 = vmatpush1.bf16.msra.mxu1 %v2463_v8 }
 0x5f1   :  { %663 = vmatprep.subr.bf16.mxu1 %v2469_v10 }
 0x5f4   :  { %664 = vmatpush1.bf16.msra.mxu1 %v2472_v11 }
 0x5f5   :  { %665 = vmatprep.subr.bf16.mxu1 %v2475_v12 }
 0x5f8   :  { %666 = vmatpush1.bf16.msra.mxu1 %v2478_v13 }
 0x5f9   :  { %813 = vmatprep.subr.bf16.mxu1 %v2455_v2  ;;  %v548_v2 = vld [vmem:[#allocation3 + $0x38] sm:$0xff] }
 0x6be   :  { %v537_v17 = vpop.f32.mrb[8].mxu1 }
 0x6bf   :  { %v538_v21 = vadd.f32 %v537_v17, %v2524_v28  ;;  %v539_v22 = vpop.f32.mrb[9].mxu1 }
 0x6c0   :  { %v541_v23 = vpop.f32.mrb[10].mxu1  ;;  %v540_v33 = vadd.f32 %v539_v22, %v2530_v39 }
 0x6c1   :  { %v549_v26 = vadd.f32 %v538_v21, %v171_v20  ;;  %v542_v27 = vpop.f32.mrb[11].mxu1  ;;  %v181_v21 = vadd.f32 %v2587_v37, %v2519_v25 }
 0x6c3   :  { %v2050_v29 = vmul.f32 -1.442695, %v549_v26 }
 0x6c5   :  { %2302 = vpow2.f32 %v2050_v29 }
 0x6cf   :  { %v2303_v30 = vpop.eup %2302 }
 0x6d0   :  { %v553_v32 = vadd.f32 1.0, %v2303_v30 }
 0x6d2   :  { %2304 = vrcp.f32 %v553_v32 }
 0x6dc   :  { %v2305_v35 = vpop.eup %2304 }
 0x6dd   :  { %v556_v36 = vmul.f32 %v2305_v35, %v540_v33  ;;  %v559_v31 = vsub.f32 1.0, %v2305_v35  ;;  %v565_v43 = vmul.f32 %v2305_v35, %v2615_v9 }
 0x6df   :  { %v557_v38 = vadd.f32 %v556_v36, %v548_v2 }
 0x6e1   :  { %2306 = vtanh.f32 %v557_v38 }
 0x6eb   :  { %v2307_v40 = vpop.eup %2306 }
 0x6ec   :  { %561 = vrot.lane.b32.xlu0 %v2307_v40, %s2408_s12 }
 0x75e   :  { %v562_v42 = vpop.permute.xlu0 %561 }
 0x75f   :  { %v564_v45 = vmul.f32 %v562_v42, %v559_v31  ;;  %v187_v42 = vadd.f32 %v2592_v41, %v2519_v25 }
 0x761   :  { %v2638_v46 = vadd.f32 %v565_v43, %v564_v45 }
 0x763   :  { %v575_v47 = vpack.c.bf16 %v2638_v46, %v2638_v46  ;;  %574 = vst.msk [vmem:[#allocation2 + $0x20] sm:$0xff] %vm336_vm2, %v2638_v46 }
 0x765   :  { %577 = vrot.lane.b32.xlu1 %v575_v47, %s2408_s12 }
 0x7d7   :  { %v578_v18 = vpop.permute.xlu1 %577 }
 0x7d8   :  { %2051 = vmatmul.mubr.msk.bf16.vlgmr.msra.gmra.mrb[20].mxu0 %vm196_vm1, %v578_v18 }
 0x7d9   :  { %737 = vmatpush1.bf16.msra.mxu0 %v2457_v4  ;;  %768 = vmatprep.mubr.bf16.mxu0 %v2407_v0 }
 0x7da   :  { %738 = vmatprep.subr.bf16.mxu0 %v2461_v6 }
 0x7dd   :  { %739 = vmatpush1.bf16.msra.mxu0 %v2463_v8 }
 0x7de   :  { %740 = vmatprep.subr.bf16.mxu0 %v2469_v10 }
 0x7e1   :  { %741 = vmatpush1.bf16.msra.mxu0 %v2472_v11 }
 0x7e2   :  { %742 = vmatprep.subr.bf16.mxu0 %v2475_v12 }
 0x7e5   :  { %743 = vmatpush1.bf16.msra.mxu0 %v2478_v13 }
 0x8ab   :  { %v616_v48 = vpop.f32.mrb[20].mxu0 }
 0x8ac   :  { %v617_v51 = vadd.f32 %v616_v48, %v2524_v28  ;;  %v618_v52 = vpop.f32.mrb[21].mxu0 }
 0x8ad   :  { %v620_v53 = vpop.f32.mrb[22].mxu0  ;;  %v619_v59 = vadd.f32 %v618_v52, %v2530_v39 }
 0x8ae   :  { %v628_v54 = vadd.f32 %v617_v51, %v177_v49  ;;  %v621_v55 = vpop.f32.mrb[23].mxu0 }
 0x8b0   :  { %v2052_v56 = vmul.f32 -1.442695, %v628_v54 }
 0x8b2   :  { %2308 = vpow2.f32 %v2052_v56  ;;  %v781_v56 = vld [vmem:[#allocation3 + $0x68] sm:$0xff] }
 0x8bc   :  { %v2309_v57 = vpop.eup %2308 }
 0x8bd   :  { %v632_v58 = vadd.f32 1.0, %v2309_v57 }
 0x8bf   :  { %2310 = vrcp.f32 %v632_v58 }
 0x8c9   :  { %v2311_v60 = vpop.eup %2310 }
 0x8ca   :  { %v635_v61 = vmul.f32 %v2311_v60, %v619_v59  ;;  %v638_v34 = vsub.f32 1.0, %v2311_v60  ;;  %v644_v5 = vmul.f32 %v2311_v60, %v2638_v46 }
 0x8cc   :  { %v636_v63 = vadd.f32 %v635_v61, %v627_v62 }
 0x8ce   :  { %2312 = vtanh.f32 %v636_v63 }
 0x8d8   :  { %v2313_v1 = vpop.eup %2312 }
 0x8d9   :  { %640 = vrot.lane.b32.xlu0 %v2313_v1, %s2408_s12 }
 0x94b   :  { %v641_v3 = vpop.permute.xlu0 %640 }
 0x94c   :  { %v643_v7 = vmul.f32 %v641_v3, %v638_v34  ;;  %v2228_v3 = vld [vmem:[#allocation4 + $0x60] ss:$8 sps:$4 sm:$0xff]  }
 0x94e   :  { %v2660_v14 = vadd.f32 %v644_v5, %v643_v7  ;;  %v2230_v5 = vld [vmem:[#allocation4 + $0x64] ss:$8 sps:$4 sm:$0xff]   ;;  %v2233_v7 = vld [vmem:[#allocation4 + $0x74] ss:$8 sps:$4 sm:$0xff]  }
 0x94f   :  { %1014 = vmatprep.subr.bf16.mxu0 %v2230_v5 }
 0x950   :  { %v652_v15 = vpack.c.bf16 %v2660_v14, %v2660_v14 }
 0x952   :  { %654 = vrot.lane.b32.xlu1 %v652_v15, %s2408_s12  ;;  %v2231_v15 = vld [vmem:[#allocation4 + $0x70] ss:$8 sps:$4 sm:$0xff]  }
 0x9c4   :  { %v655_v17 = vpop.permute.xlu1 %654 }
 0x9c5   :  { %2053 = vmatmul.mubr.msk.bf16.vlgmr.msra.gmra.mrb[12].mxu1 %vm196_vm1, %v655_v17  ;;  %v2236_v17 = vld [vmem:[#allocation4 + $0x84] ss:$8 sps:$4 sm:$0xff]  }
 0x9c6   :  { %814 = vmatpush1.bf16.msra.mxu1 %v2457_v4  ;;  %845 = vmatprep.mubr.bf16.mxu1 %v2407_v0 }
 0x9c7   :  { %815 = vmatprep.subr.bf16.mxu1 %v2461_v6 }
 0x9ca   :  { %816 = vmatpush1.bf16.msra.mxu1 %v2463_v8 }
 0x9cb   :  { %817 = vmatprep.subr.bf16.mxu1 %v2469_v10 }
 0x9ce   :  { %818 = vmatpush1.bf16.msra.mxu1 %v2472_v11 }
 0x9cf   :  { %819 = vmatprep.subr.bf16.mxu1 %v2475_v12 }
 0x9d2   :  { %820 = vmatpush1.bf16.msra.mxu1 %v2478_v13  ;;  %v704_v13 = vld [vmem:[#allocation3 + $0x58] sm:$0xff] }
 0xa98   :  { %v693_v20 = vpop.f32.mrb[12].mxu1 }
 0xa99   :  { %v694_v4 = vadd.f32 %v693_v20, %v2524_v28  ;;  %v695_v22 = vpop.f32.mrb[13].mxu1  ;;  %v2234_v20 = vld [vmem:[#allocation4 + $0x80] ss:$8 sps:$4 sm:$0xff]  }
 0xa9a   :  { %v697_v23 = vpop.f32.mrb[14].mxu1  ;;  %v696_v11 = vadd.f32 %v695_v22, %v2530_v39  ;;  %v2240_v22 = vld [vmem:[#allocation4 + $0xa0] ss:$8 sps:$4 sm:$0xff]  }
 0xa9b   :  { %v705_v26 = vadd.f32 %v694_v4, %v181_v21  ;;  %v698_v6 = vpop.f32.mrb[15].mxu1  ;;  %v2237_v21 = vld [vmem:[#allocation4 + $0x90] ss:$8 sps:$4 sm:$0xff]   ;;  %v2242_v4 = vld [vmem:[#allocation4 + $0xa4] ss:$8 sps:$4 sm:$0xff]  }
 0xa9d   :  { %v2054_v27 = vmul.f32 -1.442695, %v705_v26  ;;  %v191_v26 = vadd.f32 %v2595_v44, %v2519_v25  ;;  %v2713_v44 = vld [vmem:[#allocation4 + $0xf4] ss:$8 sps:$4 sm:$0xff]  }
 0xa9f   :  { %2314 = vpow2.f32 %v2054_v27 }
 0xaa9   :  { %v2315_v8 = vpop.eup %2314 }
 0xaaa   :  { %v709_v10 = vadd.f32 1.0, %v2315_v8 }
 0xaac   :  { %2316 = vrcp.f32 %v709_v10 }
 0xab6   :  { %v2317_v12 = vpop.eup %2316 }
 0xab7   :  { %v712_v29 = vmul.f32 %v2317_v12, %v696_v11  ;;  %v715_v37 = vsub.f32 1.0, %v2317_v12  ;;  %v721_v35 = vmul.f32 %v2317_v12, %v2660_v14 }
 0xab9   :  { %v713_v30 = vadd.f32 %v712_v29, %v704_v13 }
 0xabb   :  { %2318 = vtanh.f32 %v713_v30  ;;  %v2706_v30 = vld [vmem:[#allocation4 + $0xe4] ss:$8 sps:$4 sm:$0xff]  }
 0xabc   :  { %1154 = vmatprep.subr.bf16.mxu1 %v2706_v30 }
 0xac5   :  { %v2319_v32 = vpop.eup %2318 }
 0xac6   :  { %717 = vrot.lane.b32.xlu0 %v2319_v32, %s2408_s12  ;;  %v2708_v32 = vld [vmem:[#allocation4 + $0xe0] ss:$8 sps:$4 sm:$0xff]  }
 0xb38   :  { %v718_v33 = vpop.permute.xlu0 %717 }
 0xb39   :  { %v720_v36 = vmul.f32 %v718_v33, %v715_v37  ;;  %v858_v33 = vld [vmem:[#allocation3 + $0x78] sm:$0xff] }
 0xb3b   :  { %v2680_v2 = vadd.f32 %v721_v35, %v720_v36  ;;  %v2715_v35 = vld [vmem:[#allocation4 + $0xf0] ss:$8 sps:$4 sm:$0xff]  }
 0xb3d   :  { %v729_v38 = vpack.c.bf16 %v2680_v2, %v2680_v2 }
 0xb3f   :  { %731 = vrot.lane.b32.xlu1 %v729_v38, %s2408_s12  ;;  %v2245_v38 = vld [vmem:[#allocation4 + $0xb4] ss:$8 sps:$4 sm:$0xff]  }
 0xbb1   :  { %v732_v40 = vpop.permute.xlu1 %731 }
 0xbb2   :  { %2055 = vmatmul.mubr.msk.bf16.vlgmr.msra.gmra.mrb[24].mxu0 %vm196_vm1, %v732_v40  ;;  %v2243_v40 = vld [vmem:[#allocation4 + $0xb0] ss:$8 sps:$4 sm:$0xff]  }
 0xbb3   :  { %1046 = vmatprep.mubr.bf16.mxu0 %v2407_v0  ;;  %1015 = vmatpush1.bf16.msra.mxu0 %v2228_v3 }
 0xbb4   :  { %1016 = vmatprep.subr.bf16.mxu0 %v2233_v7 }
 0xbb7   :  { %1017 = vmatpush1.bf16.msra.mxu0 %v2231_v15 }
 0xbb8   :  { %1018 = vmatprep.subr.bf16.mxu0 %v2236_v17 }
 0xbbb   :  { %1019 = vmatpush1.bf16.msra.mxu0 %v2234_v20 }
 0xc85   :  { %v770_v31 = vpop.f32.mrb[24].mxu0 }
 0xc86   :  { %v771_v43 = vadd.f32 %v770_v31, %v2524_v28  ;;  %v772_v45 = vpop.f32.mrb[25].mxu0  ;;  %v2721_v31 = vld [vmem:[#allocation4 + $0x100] ss:$8 sps:$4 sm:$0xff]  }
 0xc87   :  { %v774_v47 = vpop.f32.mrb[26].mxu0  ;;  %v773_v53 = vadd.f32 %v772_v45, %v2530_v39  ;;  %v2257_v45 = vld [vmem:[#allocation4 + $0xd4] ss:$8 sps:$4 sm:$0xff]  }
 0xc88   :  { %v782_v18 = vadd.f32 %v771_v43, %v187_v42  ;;  %v775_v48 = vpop.f32.mrb[27].mxu0  ;;  %v2249_v42 = vld [vmem:[#allocation4 + $0xc0] ss:$8 sps:$4 sm:$0xff]   ;;  %v2251_v43 = vld [vmem:[#allocation4 + $0xc4] ss:$8 sps:$4 sm:$0xff]  }
 0xc89   :  { %v2725_v47 = vld [vmem:[#allocation4 + $0x114] ss:$8 sps:$4 sm:$0xff]   ;;  %v2255_v48 = vld [vmem:[#allocation4 + $0xd0] ss:$8 sps:$4 sm:$0xff]  }
 0xc8a   :  { %v2056_v49 = vmul.f32 -1.442695, %v782_v18  ;;  %v2727_v18 = vld [vmem:[#allocation4 + $0x110] ss:$8 sps:$4 sm:$0xff]  }
 0xc8c   :  { %2320 = vpow2.f32 %v2056_v49 }
 0xc96   :  { %v2321_v51 = vpop.eup %2320 }
 0xc97   :  { %v786_v52 = vadd.f32 1.0, %v2321_v51 }
 0xc99   :  { %2322 = vrcp.f32 %v786_v52 }
 0xca3   :  { %v2323_v54 = vpop.eup %2322 }
 0xca4   :  { %v789_v55 = vmul.f32 %v2323_v54, %v773_v53  ;;  %v792_v41 = vsub.f32 1.0, %v2323_v54  ;;  %v798_v60 = vmul.f32 %v2323_v54, %v2680_v2 }
 0xca6   :  { %v790_v57 = vadd.f32 %v789_v55, %v781_v56 }
 0xca8   :  { %2324 = vtanh.f32 %v790_v57 }
 0xcb2   :  { %v2325_v58 = vpop.eup %2324 }
 0xcb3   :  { %794 = vrot.lane.b32.xlu0 %v2325_v58, %s2408_s12 }
 0xd25   :  { %v795_v59 = vpop.permute.xlu0 %794 }
 0xd26   :  { %v797_v61 = vmul.f32 %v795_v59, %v792_v41 }
 0xd28   :  { %v2693_v62 = vadd.f32 %v798_v60, %v797_v61 }
 0xd2a   :  { %v806_v63 = vpack.c.bf16 %v2693_v62, %v2693_v62 }
 0xd2c   :  { %808 = vrot.lane.b32.xlu1 %v806_v63, %s2408_s12  ;;  %v2060_v63 = vld [vmem:[%s3061_s2 + $0x3] ss:$4 sm:$0x3] }
 0xd30   :  { %331 = vrot.lane.b32.xlu1 %v2534_v50, %s2408_s12  ;;  %v2239_v50 = vld [vmem:[#allocation4 + $0x94] ss:$8 sps:$4 sm:$0xff]  }
 0xd31   :  { %1020 = vmatprep.subr.bf16.mxu0 %v2239_v50 }
 0xd32   :  { %1021 = vmatpush1.bf16.msra.mxu0 %v2237_v21 }
 0xd33   :  { %1022 = vmatprep.subr.bf16.mxu0 %v2242_v4 }
 0xd36   :  { %1023 = vmatpush1.bf16.msra.mxu0 %v2240_v22 }
 0xd37   :  { %1024 = vmatprep.subr.bf16.mxu0 %v2245_v38 }
 0xd3a   :  { %1025 = vmatpush1.bf16.msra.mxu0 %v2243_v40 }
 0xd3b   :  { %1026 = vmatprep.subr.bf16.mxu0 %v2251_v43 }
 0xd3e   :  { %1027 = vmatpush1.bf16.msra.mxu0 %v2249_v42 }
 0xd3f   :  { %1028 = vmatprep.subr.bf16.mxu0 %v2257_v45 }
 0xd42   :  { %1029 = vmatpush1.bf16.msra.mxu0 %v2255_v48 }
 0xd43   :  { %1361 = vmatprep.subr.bf16.mxu0 %v2706_v30 }
 0xd9e   :  { %v809_v1 = vpop.permute.xlu1 %808 }
 0xd9f   :  { %2057 = vmatmul.mubr.msk.bf16.vlgmr.msra.gmra.mrb[16].mxu1 %vm196_vm1, %v809_v1  ;;  %v2059_v1 = vld [vmem:[%s3061_s2 + $0x2] ss:$4 sm:$0x3] }
 0xda0   :  { %1186 = vmatprep.mubr.bf16.mxu1 %v2407_v0  ;;  %1155 = vmatpush1.bf16.msra.mxu1 %v2708_v32  ;;  %v2773_v3 = vrot.slane %v2059_v1, %v2512_v19  ;;  %v2776_v5 = vrot.slane %v2059_v1, %v2504_v16 }
 0xda1   :  { %1156 = vmatprep.subr.bf16.mxu1 %v2713_v44 }
 0xda2   :  { %v332_v34 = vpop.permute.xlu1 %331 }
 0xda3   :  { %334 = vst.msk [vmem:[#allocation2] sm:$0xff] %vm196_vm1, %v332_v34  ;;  %v2770_v34 = vrot.slane %v2060_v63, %v2512_v19 }
 0xda4   :  { %1157 = vmatpush1.bf16.msra.mxu1 %v2715_v35 }
 0xe72   :  { %v847_v23 = vpop.f32.mrb[16].mxu1 }
 0xe73   :  { %v848_v6 = vadd.f32 %v847_v23, %v2524_v28  ;;  %v849_v27 = vpop.f32.mrb[17].mxu1 }
 0xe74   :  { %v851_v8 = vpop.f32.mrb[18].mxu1  ;;  %v850_v37 = vadd.f32 %v849_v27, %v2530_v39  ;;  %v2719_v39 = vld [vmem:[#allocation4 + $0x104] ss:$8 sps:$4 sm:$0xff]  }
 0xe75   :  { %v859_v10 = vadd.f32 %v848_v6, %v191_v26  ;;  %v852_v11 = vpop.f32.mrb[19].mxu1  ;;  %1158 = vmatprep.subr.bf16.mxu1 %v2719_v39  ;;  %v2786_v8 = vrot.slane %v2060_v63, %v2504_v16 }
 0xe76   :  { %1159 = vmatpush1.bf16.msra.mxu1 %v2721_v31 }
 0xe77   :  { %v2058_v12 = vmul.f32 -1.442695, %v859_v10  ;;  %1160 = vmatprep.subr.bf16.mxu1 %v2725_v47 }
 0xe79   :  { %2326 = vpow2.f32 %v2058_v12 }
 0xe7a   :  { %1161 = vmatpush1.bf16.msra.mxu1 %v2727_v18 }
 0xe7b   :  { %1223 = vmatprep.subr.bf16.mxu1 %v2706_v30 }
 0xe7d   :  { %1187 = vmatmul.mubr.bf16.vlgmr.msra.gmra.mrb[20].mxu1 %v2407_v0 }
 0xe7e   :  { %1224 = vmatpush1.bf16.msra.mxu1 %v2708_v32  ;;  %1255 = vmatprep.mubr.bf16.mxu1 %v2407_v0 }
 0xe7f   :  { %1225 = vmatprep.subr.bf16.mxu1 %v2713_v44 }
 0xe82   :  { %1226 = vmatpush1.bf16.msra.mxu1 %v2715_v35 }
 0xe83   :  { %v2327_v29 = vpop.eup %2326  ;;  %1227 = vmatprep.subr.bf16.mxu1 %v2719_v39 }
 0xe84   :  { %v863_v13 = vadd.f32 1.0, %v2327_v29 }
 0xe86   :  { %2328 = vrcp.f32 %v863_v13  ;;  %1228 = vmatpush1.bf16.msra.mxu1 %v2721_v31 }
 0xe87   :  { %1229 = vmatprep.subr.bf16.mxu1 %v2725_v47 }
 0xe8a   :  { %1230 = vmatpush1.bf16.msra.mxu1 %v2727_v18 }
 0xe8b   :  { %1292 = vmatprep.subr.bf16.mxu1 %v2706_v30 }
 0xe90   :  { %v2329_v25 = vpop.eup %2328 }
 0xe91   :  { %v866_v28 = vmul.f32 %v2329_v25, %v850_v37  ;;  %v869_v51 = vsub.f32 1.0, %v2329_v25  ;;  %v875_v53 = vmul.f32 %v2329_v25, %v2693_v62 }
 0xe93   :  { %v867_v36 = vadd.f32 %v866_v28, %v858_v33 }
 0xe95   :  { %2330 = vtanh.f32 %v867_v36 }
 0xe9f   :  { %v2331_v49 = vpop.eup %2330 }
 0xea0   :  { %871 = vrot.lane.b32.xlu0 %v2331_v49, %s2408_s12 }
 0xea4   :  { %410 = vrot.lane.b32.xlu0 %v2571_v24, %s2408_s12 }
 0xf12   :  { %v872_v52 = vpop.permute.xlu0 %871 }
 0xf13   :  { %v874_v54 = vmul.f32 %v872_v52, %v869_v51 }
 0xf15   :  { %v2747_v55 = vadd.f32 %v875_v53, %v874_v54 }
 0xf16   :  { %v411_v24 = vpop.permute.xlu0 %410 }
 0xf17   :  { %882 = vst.msk [vmem:[#allocation2] sm:$0xff] %vm336_vm2, %v2747_v55 }
 0xf18   :  { %414 = vst.msk [vmem:[#allocation2 + $0x8] sm:$0xff] %vm196_vm1, %v411_v24 }
 0xf19   :  { %805 = vst.msk [vmem:[#allocation2 + $0x8] sm:$0xff] %vm336_vm2, %v2693_v62 }
 0xf1e   :  { %v911_v56 = vld [vmem:[#allocation2] sm:$0xff] }
 0xf20   :  { %v912_v57 = vld [vmem:[#allocation2 + $0x8] sm:$0xff] }
 0xf21   :  { %v919_v58 = vpack.c.bf16 %v912_v57, %v911_v56 }
 0xf23   :  { %1047 = vmatmul.mubr.bf16.vlgmr.msra.gmra.mrb[28].mxu0 %v919_v58 }
 0xf24   :  { %1056 = vmatprep.mubr.bf16.mxu0 %v2407_v0  ;;  %1362 = vmatpush1.bf16.msra.mxu0 %v2708_v32 }
 0xf25   :  { %1363 = vmatprep.subr.bf16.mxu0 %v2713_v44 }
 0xf28   :  { %1364 = vmatpush1.bf16.msra.mxu0 %v2715_v35 }
 0xf29   :  { %1365 = vmatprep.subr.bf16.mxu0 %v2719_v39 }
 0xf2c   :  { %1366 = vmatpush1.bf16.msra.mxu0 %v2721_v31 }
 0xf2d   :  { %1367 = vmatprep.subr.bf16.mxu0 %v2725_v47 }
 0xf30   :  { %1368 = vmatpush1.bf16.msra.mxu0 %v2727_v18 }
 0xf31   :  { %1499 = vmatprep.subr.bf16.mxu0 %v2706_v30 }
 0xf50   :  { %v1188_v41 = vpop.f32.mrb[20].mxu1 }
 0xf51   :  { %v1190_v59 = vpop.f32.mrb[21].mxu1  ;;  %v1189_v7 = vadd.f32 %v1188_v41, %v2770_v34 }
 0xf52   :  { %v1192_v60 = vpop.f32.mrb[22].mxu1  ;;  %v1191_v10 = vadd.f32 %v1190_v59, %v2786_v8 }
 0xf53   :  { %v1193_v61 = vpop.f32.mrb[23].mxu1 }
 0xff6   :  { %v1048_v15 = vpop.f32.mrb[28].mxu0 }
 0xff7   :  { %v1049_v17 = vadd.f32 %v1048_v15, %v2773_v3  ;;  %v1050_v20 = vpop.f32.mrb[29].mxu0 }
 0xff8   :  { %v1051_v50 = vadd.f32 %v1050_v20, %v2776_v5  ;;  %v1052_v21 = vpop.f32.mrb[30].mxu0 }
 0xff9   :  { %v1053_v4 = vadd.f32 %v1052_v21, %v2773_v3  ;;  %v1054_v22 = vpop.f32.mrb[31].mxu0  ;;  %v1197_v23 = vadd.f32 %v1189_v7, %v1049_v17 }
 0xffa   :  { %1088 = vst.msk [vmem:[#allocation3 + $0x8] sm:$0xff] %vm196_vm1, %v1051_v50  ;;  %v1055_v19 = vadd.f32 %v1054_v22, %v2776_v5 }
 0xffb   :  { %v2085_v26 = vmul.f32 -1.442695, %v1197_v23 }
 0xffc   :  { %1090 = vst.msk [vmem:[#allocation3 + $0x18] sm:$0xff] %vm196_vm1, %v1055_v19 }
 0xffd   :  { %2332 = vpow2.f32 %v2085_v26 }
0x1001   :  { %v1196_v29 = vld [vmem:[#allocation3 + $0x8] sm:$0xff] }
0x1003   :  { %v1265_v58 = vld [vmem:[#allocation3 + $0x18] sm:$0xff] }
0x1007   :  { %v2333_v6 = vpop.eup %2332 }
0x1008   :  { %v1201_v27 = vadd.f32 1.0, %v2333_v6 }
0x100a   :  { %2334 = vrcp.f32 %v1201_v27 }
0x1014   :  { %v2335_v11 = vpop.eup %2334 }
0x1015   :  { %v1204_v12 = vmul.f32 %v2335_v11, %v1191_v10  ;;  %v1207_v25 = vsub.f32 1.0, %v2335_v11  ;;  %v1213_v33 = vmul.f32 0.0, %v2335_v11 }
0x1017   :  { %v1205_v13 = vadd.f32 %v1204_v12, %v1196_v29 }
0x1019   :  { %2336 = vtanh.f32 %v1205_v13 }
0x1023   :  { %v2337_v37 = vpop.eup %2336 }
0x1024   :  { %1209 = vrot.lane.b32.xlu1 %v2337_v37, %s2408_s12 }
0x1096   :  { %v1210_v28 = vpop.permute.xlu1 %1209 }
0x1097   :  { %v1212_v36 = vmul.f32 %v1210_v28, %v1207_v25 }
0x1099   :  { %v2790_v38 = vadd.f32 %v1213_v33, %v1212_v36 }
0x109b   :  { %v1216_v16 = vpack.c.bf16 %v2790_v38, %v2790_v38 }
0x109d   :  { %1218 = vrot.lane.b32.xlu0 %v1216_v16, %s2408_s12 }
0x10a1   :  { %489 = vrot.lane.b32.xlu0 %v2615_v9, %s2408_s12 }
0x110f   :  { %v1219_v40 = vpop.permute.xlu0 %1218 }
0x1110   :  { %2086 = vmatmul.mubr.msk.bf16.vlgmr.msra.gmra.mrb[24].mxu1 %vm196_vm1, %v1219_v40 }
0x1111   :  { %1293 = vmatpush1.bf16.msra.mxu1 %v2708_v32  ;;  %1324 = vmatprep.mubr.bf16.mxu1 %v2407_v0 }
0x1112   :  { %1294 = vmatprep.subr.bf16.mxu1 %v2713_v44 }
0x1113   :  { %v490_v42 = vpop.permute.xlu0 %489 }
0x1114   :  { %493 = vst.msk [vmem:[#allocation2 + $0x10] sm:$0xff] %vm196_vm1, %v490_v42 }
0x1115   :  { %728 = vst.msk [vmem:[#allocation2 + $0x10] sm:$0xff] %vm336_vm2, %v2680_v2  ;;  %1295 = vmatpush1.bf16.msra.mxu1 %v2715_v35 }
0x1116   :  { %1296 = vmatprep.subr.bf16.mxu1 %v2719_v39 }
0x1119   :  { %1297 = vmatpush1.bf16.msra.mxu1 %v2721_v31 }
0x111a   :  { %1298 = vmatprep.subr.bf16.mxu1 %v2725_v47 }
0x111d   :  { %1299 = vmatpush1.bf16.msra.mxu1 %v2727_v18 }
0x111e   :  { %1430 = vmatprep.subr.bf16.mxu1 %v2706_v30 }
0x11e3   :  { %v1257_v9 = vpop.f32.mrb[24].mxu1 }
0x11e4   :  { %v1258_v43 = vadd.f32 %v1257_v9, %v2770_v34  ;;  %v1259_v45 = vpop.f32.mrb[25].mxu1 }
0x11e5   :  { %v1261_v48 = vpop.f32.mrb[26].mxu1  ;;  %v1260_v24 = vadd.f32 %v1259_v45, %v2786_v8 }
0x11e6   :  { %v1266_v49 = vadd.f32 %v1258_v43, %v1053_v4  ;;  %v1262_v51 = vpop.f32.mrb[27].mxu1 }
0x11e8   :  { %v2087_v52 = vmul.f32 -1.442695, %v1266_v49 }
0x11ea   :  { %2338 = vpow2.f32 %v2087_v52 }
0x11f4   :  { %v2339_v53 = vpop.eup %2338 }
0x11f5   :  { %v1270_v54 = vadd.f32 1.0, %v2339_v53 }
0x11f7   :  { %2340 = vrcp.f32 %v1270_v54 }
0x1201   :  { %v2341_v56 = vpop.eup %2340 }
0x1202   :  { %v1273_v57 = vmul.f32 %v2341_v56, %v1260_v24  ;;  %v1276_v60 = vsub.f32 1.0, %v2341_v56  ;;  %v1282_v63 = vmul.f32 %v2341_v56, %v2790_v38 }
0x1204   :  { %v1274_v41 = vadd.f32 %v1273_v57, %v1265_v58 }
0x1206   :  { %2342 = vtanh.f32 %v1274_v41 }
0x1210   :  { %v2343_v59 = vpop.eup %2342 }
0x1211   :  { %1278 = vrot.lane.b32.xlu1 %v2343_v59, %s2408_s12 }
0x1215   :  { %568 = vrot.lane.b32.xlu1 %v2638_v46, %s2408_s12  ;;  %v913_v46 = vld [vmem:[#allocation2 + $0x10] sm:$0xff] }
0x1283   :  { %v1279_v61 = vpop.permute.xlu1 %1278 }
0x1284   :  { %v1281_v1 = vmul.f32 %v1279_v61, %v1276_v60 }
0x1286   :  { %v2816_v7 = vadd.f32 %v1282_v63, %v1281_v1 }
0x1287   :  { %v569_v15 = vpop.permute.xlu1 %568 }
0x1288   :  { %572 = vst.msk [vmem:[#allocation2 + $0x18] sm:$0xff] %vm196_vm1, %v569_v15  ;;  %v1285_v17 = vpack.c.bf16 %v2816_v7, %v2816_v7 }
0x1289   :  { %651 = vst.msk [vmem:[#allocation2 + $0x18] sm:$0xff] %vm336_vm2, %v2660_v14 }
0x128a   :  { %1287 = vrot.lane.b32.xlu0 %v1285_v17, %s2408_s12 }
0x128e   :  { %647 = vrot.lane.b32.xlu0 %v2660_v14, %s2408_s12 }
0x1290   :  { %v914_v20 = vld [vmem:[#allocation2 + $0x18] sm:$0xff] }
0x1291   :  { %v920_v50 = vpack.c.bf16 %v914_v20, %v913_v46 }
0x1292   :  { %801 = vrot.lane.b32.xlu0 %v2693_v62, %s2408_s12 }
0x1293   :  { %1057 = vmatmul.mubr.bf16.gmra.mrb[32].mxu0 %v920_v50 }
0x1294   :  { %1066 = vmatprep.mubr.bf16.mxu0 %v2407_v0 }
0x12fc   :  { %v1288_v21 = vpop.permute.xlu0 %1287 }
0x12fd   :  { %2088 = vmatmul.mubr.msk.bf16.vlgmr.msra.gmra.mrb[28].mxu1 %vm196_vm1, %v1288_v21 }
0x12fe   :  { %1431 = vmatpush1.bf16.msra.mxu1 %v2708_v32  ;;  %1462 = vmatprep.mubr.bf16.mxu1 %v2407_v0 }
0x12ff   :  { %1432 = vmatprep.subr.bf16.mxu1 %v2713_v44 }
0x1300   :  { %v648_v4 = vpop.permute.xlu0 %647 }
0x1301   :  { %650 = vst.msk [vmem:[#allocation2 + $0x20] sm:$0xff] %vm196_vm1, %v648_v4 }
0x1302   :  { %1433 = vmatpush1.bf16.msra.mxu1 %v2715_v35 }
0x1303   :  { %1434 = vmatprep.subr.bf16.mxu1 %v2719_v39 }
0x1304   :  { %v802_v14 = vpop.permute.xlu0 %801 }
0x1305   :  { %804 = vst.msk [vmem:[#allocation2 + $0x30] sm:$0xff] %vm196_vm1, %v802_v14 }
0x1306   :  { %1435 = vmatpush1.bf16.msra.mxu1 %v2721_v31 }
0x1307   :  { %1436 = vmatprep.subr.bf16.mxu1 %v2725_v47 }
0x130a   :  { %1437 = vmatpush1.bf16.msra.mxu1 %v2727_v18 }
0x130b   :  { %1568 = vmatprep.subr.bf16.mxu1 %v2706_v30 }
0x130c   :  { %v917_v41 = vld [vmem:[#allocation2 + $0x30] sm:$0xff] }
0x1366   :  { %v1058_v62 = vpop.f32.mrb[32].mxu0 }
0x1367   :  { %v1059_v22 = vadd.f32 %v1058_v62, %v2773_v3  ;;  %v1060_v23 = vpop.f32.mrb[33].mxu0 }
0x1368   :  { %v1061_v19 = vadd.f32 %v1060_v23, %v2776_v5  ;;  %v1062_v26 = vpop.f32.mrb[34].mxu0 }
0x1369   :  { %v2844_v6 = vadd.f32 %v1062_v26, %v2773_v3  ;;  %v1064_v27 = vpop.f32.mrb[35].mxu0 }
0x136a   :  { %1092 = vst.msk [vmem:[#allocation3 + $0x28] sm:$0xff] %vm196_vm1, %v1061_v19  ;;  %v1065_v10 = vadd.f32 %v1064_v27, %v2776_v5 }
0x136c   :  { %1094 = vst.msk [vmem:[#allocation3 + $0x38] sm:$0xff] %vm196_vm1, %v1065_v10 }
0x1371   :  { %v1334_v9 = vld [vmem:[#allocation3 + $0x28] sm:$0xff] }
0x13d0   :  { %v1326_v11 = vpop.f32.mrb[28].mxu1 }
0x13d1   :  { %v1327_v12 = vadd.f32 %v1326_v11, %v2770_v34  ;;  %v1328_v29 = vpop.f32.mrb[29].mxu1 }
0x13d2   :  { %v1330_v13 = vpop.f32.mrb[30].mxu1  ;;  %v1329_v16 = vadd.f32 %v1328_v29, %v2786_v8 }
0x13d3   :  { %v1335_v37 = vadd.f32 %v1327_v12, %v1059_v22  ;;  %v1331_v25 = vpop.f32.mrb[31].mxu1 }
0x13d5   :  { %v2089_v28 = vmul.f32 -1.442695, %v1335_v37 }
0x13d7   :  { %2344 = vpow2.f32 %v2089_v28 }
0x13e1   :  { %v2345_v33 = vpop.eup %2344 }
0x13e2   :  { %v1339_v36 = vadd.f32 1.0, %v2345_v33 }
0x13e4   :  { %2346 = vrcp.f32 %v1339_v36 }
0x13ee   :  { %v2347_v40 = vpop.eup %2346 }
0x13ef   :  { %v1342_v42 = vmul.f32 %v2347_v40, %v1329_v16  ;;  %v1345_v48 = vsub.f32 1.0, %v2347_v40  ;;  %v1351_v51 = vmul.f32 %v2347_v40, %v2816_v7 }
0x13f1   :  { %v1343_v43 = vadd.f32 %v1342_v42, %v1334_v9 }
0x13f3   :  { %2348 = vtanh.f32 %v1343_v43 }
0x13fd   :  { %v2349_v45 = vpop.eup %2348 }
0x13fe   :  { %1347 = vrot.lane.b32.xlu1 %v2349_v45, %s2408_s12 }
0x1402   :  { %724 = vrot.lane.b32.xlu1 %v2680_v2, %s2408_s12  ;;  %v915_v2 = vld [vmem:[#allocation2 + $0x20] sm:$0xff] }
0x1406   :  { %878 = vrot.lane.b32.xlu1 %v2747_v55, %s2408_s12 }
0x1470   :  { %v1348_v49 = vpop.permute.xlu1 %1347 }
0x1471   :  { %v1350_v52 = vmul.f32 %v1348_v49, %v1345_v48 }
0x1473   :  { %v2857_v53 = vadd.f32 %v1351_v51, %v1350_v52 }
0x1474   :  { %v725_v54 = vpop.permute.xlu1 %724 }
0x1475   :  { %727 = vst.msk [vmem:[#allocation2 + $0x28] sm:$0xff] %vm196_vm1, %v725_v54  ;;  %v1354_v24 = vpack.c.bf16 %v2857_v53, %v2857_v53 }
0x1477   :  { %1356 = vrot.lane.b32.xlu0 %v1354_v24, %s2408_s12 }
0x1478   :  { %v879_v56 = vpop.permute.xlu1 %878 }
0x1479   :  { %881 = vst.msk [vmem:[#allocation2 + $0x38] sm:$0xff] %vm196_vm1, %v879_v56 }
0x147c   :  { %v916_v55 = vld [vmem:[#allocation2 + $0x28] sm:$0xff] }
0x147d   :  { %v921_v57 = vpack.c.bf16 %v916_v55, %v915_v2 }
0x147f   :  { %1067 = vmatmul.mubr.bf16.gmra.mrb[36].mxu0 %v921_v57 }
0x1480   :  { %1076 = vmatprep.mubr.bf16.mxu0 %v2407_v0  ;;  %v918_v58 = vld [vmem:[#allocation2 + $0x38] sm:$0xff] }
0x1481   :  { %v922_v59 = vpack.c.bf16 %v918_v58, %v917_v41 }
0x1487   :  { %1077 = vmatmul.mubr.bf16.gmra.mrb[40].mxu0 %v922_v59 }
0x1488   :  { %1393 = vmatprep.mubr.bf16.mxu0 %v2407_v0 }
0x14e9   :  { %v1357_v60 = vpop.permute.xlu0 %1356 }
0x14ea   :  { %2090 = vmatmul.mubr.msk.bf16.vlgmr.msra.gmra.mrb[44].mxu0 %vm196_vm1, %v1357_v60 }
0x14eb   :  { %1500 = vmatpush1.bf16.msra.mxu0 %v2708_v32  ;;  %1531 = vmatprep.mubr.bf16.mxu0 %v2407_v0 }
0x14ec   :  { %1501 = vmatprep.subr.bf16.mxu0 %v2713_v44 }
0x14ef   :  { %1502 = vmatpush1.bf16.msra.mxu0 %v2715_v35 }
0x14f0   :  { %1503 = vmatprep.subr.bf16.mxu0 %v2719_v39 }
0x14f3   :  { %1504 = vmatpush1.bf16.msra.mxu0 %v2721_v31 }
0x14f4   :  { %1505 = vmatprep.subr.bf16.mxu0 %v2725_v47 }
0x14f7   :  { %1506 = vmatpush1.bf16.msra.mxu0 %v2727_v18 }
0x14f8   :  { %1637 = vmatprep.subr.bf16.mxu0 %v2706_v30 }
0x1552   :  { %v1068_v61 = vpop.f32.mrb[36].mxu0 }
0x1553   :  { %v1069_v63 = vadd.f32 %v1068_v61, %v2773_v3  ;;  %v1070_v1 = vpop.f32.mrb[37].mxu0 }
0x1554   :  { %v1071_v15 = vadd.f32 %v1070_v1, %v2776_v5  ;;  %v1072_v17 = vpop.f32.mrb[38].mxu0 }
0x1555   :  { %v2879_v46 = vadd.f32 %v1072_v17, %v2773_v3  ;;  %v1074_v20 = vpop.f32.mrb[39].mxu0 }
0x1556   :  { %1096 = vst.msk [vmem:[#allocation3 + $0x48] sm:$0xff] %vm196_vm1, %v1071_v15  ;;  %v1075_v50 = vadd.f32 %v1074_v20, %v2776_v5 }
0x1558   :  { %1098 = vst.msk [vmem:[#allocation3 + $0x58] sm:$0xff] %vm196_vm1, %v1075_v50 }
0x155a   :  { %v1078_v21 = vpop.f32.mrb[40].mxu0 }
0x155b   :  { %v2885_v30 = vadd.f32 %v1078_v21, %v2773_v3  ;;  %v1080_v4 = vpop.f32.mrb[41].mxu0 }
0x155c   :  { %v1081_v14 = vadd.f32 %v1080_v4, %v2776_v5  ;;  %v1082_v62 = vpop.f32.mrb[42].mxu0 }
0x155d   :  { %v2889_v22 = vadd.f32 %v1082_v62, %v2773_v3  ;;  %v1084_v23 = vpop.f32.mrb[43].mxu0  ;;  %v1472_v60 = vld [vmem:[#allocation3 + $0x48] sm:$0xff] }
0x155e   :  { %1100 = vst.msk [vmem:[#allocation3 + $0x68] sm:$0xff] %vm196_vm1, %v1081_v14  ;;  %v1085_v19 = vadd.f32 %v1084_v23, %v2776_v5  ;;  %v1403_v5 = vld [vmem:[#allocation3 + $0x38] sm:$0xff] }
0x1560   :  { %1102 = vst.msk [vmem:[#allocation3 + $0x78] sm:$0xff] %vm196_vm1, %v1085_v19 }
0x15bd   :  { %v1395_v26 = vpop.f32.mrb[44].mxu0 }
0x15be   :  { %v1396_v27 = vadd.f32 %v1395_v26, %v2770_v34  ;;  %v1397_v10 = vpop.f32.mrb[45].mxu0 }
0x15bf   :  { %v1399_v11 = vpop.f32.mrb[46].mxu0  ;;  %v1398_v25 = vadd.f32 %v1397_v10, %v2786_v8 }
0x15c0   :  { %v1404_v12 = vadd.f32 %v1396_v27, %v2844_v6  ;;  %v1400_v29 = vpop.f32.mrb[47].mxu0 }
0x15c2   :  { %v2091_v13 = vmul.f32 -1.442695, %v1404_v12 }
0x15c4   :  { %2350 = vpow2.f32 %v2091_v13 }
0x15ce   :  { %v2351_v37 = vpop.eup %2350 }
0x15cf   :  { %v1408_v3 = vadd.f32 1.0, %v2351_v37 }
0x15d1   :  { %2352 = vrcp.f32 %v1408_v3 }
0x15db   :  { %v2353_v28 = vpop.eup %2352 }
0x15dc   :  { %v1411_v33 = vmul.f32 %v2353_v28, %v1398_v25  ;;  %v1414_v40 = vsub.f32 1.0, %v2353_v28  ;;  %v1420_v6 = vmul.f32 %v2353_v28, %v2857_v53 }
0x15de   :  { %v1412_v36 = vadd.f32 %v1411_v33, %v1403_v5 }
0x15e0   :  { %2354 = vtanh.f32 %v1412_v36 }
0x15ea   :  { %v2355_v16 = vpop.eup %2354 }
0x15eb   :  { %1416 = vrot.lane.b32.xlu1 %v2355_v16, %s2408_s12 }
0x165d   :  { %v1417_v42 = vpop.permute.xlu1 %1416 }
0x165e   :  { %v1419_v9 = vmul.f32 %v1417_v42, %v1414_v40 }
0x1660   :  { %v2899_v43 = vadd.f32 %v1420_v6, %v1419_v9 }
0x1662   :  { %v1423_v45 = vpack.c.bf16 %v2899_v43, %v2899_v43 }
0x1664   :  { %1425 = vrot.lane.b32.xlu0 %v1423_v45, %s2408_s12 }
0x16d6   :  { %v1426_v48 = vpop.permute.xlu0 %1425 }
0x16d7   :  { %2092 = vmatmul.mubr.msk.bf16.vlgmr.msra.gmra.mrb[32].mxu1 %vm196_vm1, %v1426_v48 }
0x16d8   :  { %1569 = vmatpush1.bf16.msra.mxu1 %v2708_v32  ;;  %1600 = vmatprep.mubr.bf16.mxu1 %v2407_v0 }
0x16d9   :  { %1570 = vmatprep.subr.bf16.mxu1 %v2713_v44 }
0x16dc   :  { %1571 = vmatpush1.bf16.msra.mxu1 %v2715_v35 }
0x16dd   :  { %1572 = vmatprep.subr.bf16.mxu1 %v2719_v39 }
0x16e0   :  { %1573 = vmatpush1.bf16.msra.mxu1 %v2721_v31 }
0x16e1   :  { %1574 = vmatprep.subr.bf16.mxu1 %v2725_v47 }
0x16e4   :  { %1575 = vmatpush1.bf16.msra.mxu1 %v2727_v18 }
0x17aa   :  { %v1464_v49 = vpop.f32.mrb[32].mxu1 }
0x17ab   :  { %v1465_v51 = vadd.f32 %v1464_v49, %v2770_v34  ;;  %v1466_v52 = vpop.f32.mrb[33].mxu1  ;;  %v1610_v49 = vld [vmem:[#allocation3 + $0x68] sm:$0xff] }
0x17ac   :  { %v1468_v54 = vpop.f32.mrb[34].mxu1  ;;  %v1467_v58 = vadd.f32 %v1466_v52, %v2786_v8 }
0x17ad   :  { %v1473_v24 = vadd.f32 %v1465_v51, %v1069_v63  ;;  %v1469_v56 = vpop.f32.mrb[35].mxu1 }
0x17af   :  { %v2093_v2 = vmul.f32 -1.442695, %v1473_v24 }
0x17b1   :  { %2356 = vpow2.f32 %v2093_v2 }
0x17bb   :  { %v2357_v55 = vpop.eup %2356 }
0x17bc   :  { %v1477_v57 = vadd.f32 1.0, %v2357_v55 }
0x17be   :  { %2358 = vrcp.f32 %v1477_v57 }
0x17c8   :  { %v2359_v41 = vpop.eup %2358 }
0x17c9   :  { %v1480_v59 = vmul.f32 %v2359_v41, %v1467_v58  ;;  %v1483_v15 = vsub.f32 1.0, %v2359_v41  ;;  %v1489_v63 = vmul.f32 %v2359_v41, %v2899_v43 }
0x17cb   :  { %v1481_v61 = vadd.f32 %v1480_v59, %v1472_v60 }
0x17cd   :  { %2360 = vtanh.f32 %v1481_v61 }
0x17d7   :  { %v2361_v1 = vpop.eup %2360 }
0x17d8   :  { %1485 = vrot.lane.b32.xlu1 %v2361_v1, %s2408_s12 }
0x184a   :  { %v1486_v17 = vpop.permute.xlu1 %1485 }
0x184b   :  { %v1488_v20 = vmul.f32 %v1486_v17, %v1483_v15 }
0x184d   :  { %v2917_v50 = vadd.f32 %v1489_v63, %v1488_v20 }
0x184f   :  { %v1492_v21 = vpack.c.bf16 %v2917_v50, %v2917_v50 }
0x1851   :  { %1494 = vrot.lane.b32.xlu0 %v1492_v21, %s2408_s12 }
0x18c3   :  { %v1495_v4 = vpop.permute.xlu0 %1494 }
0x18c4   :  { %2094 = vmatmul.mubr.msk.bf16.vlgmr.msra.gmra.mrb[48].mxu0 %vm196_vm1, %v1495_v4 }
0x18c5   :  { %1638 = vmatpush1.bf16.msra.mxu0 %v2708_v32  ;;  %1669 = vmatprep.mubr.bf16.mxu0 %v2407_v0 }
0x18c6   :  { %1639 = vmatprep.subr.bf16.mxu0 %v2713_v44 }
0x18c9   :  { %1640 = vmatpush1.bf16.msra.mxu0 %v2715_v35 }
0x18ca   :  { %1641 = vmatprep.subr.bf16.mxu0 %v2719_v39 }
0x18cd   :  { %1642 = vmatpush1.bf16.msra.mxu0 %v2721_v31 }
0x18ce   :  { %1643 = vmatprep.subr.bf16.mxu0 %v2725_v47  ;;  %v1541_v47 = vld [vmem:[#allocation3 + $0x58] sm:$0xff] }
0x18d1   :  { %1644 = vmatpush1.bf16.msra.mxu0 %v2727_v18 }
0x1997   :  { %v1533_v14 = vpop.f32.mrb[48].mxu0 }
0x1998   :  { %v1534_v62 = vadd.f32 %v1533_v14, %v2770_v34  ;;  %v1535_v23 = vpop.f32.mrb[49].mxu0  ;;  %v1679_v14 = vld [vmem:[#allocation3 + $0x78] sm:$0xff] }
0x1999   :  { %v1537_v19 = vpop.f32.mrb[50].mxu0  ;;  %v1536_v39 = vadd.f32 %v1535_v23, %v2786_v8  ;;  %v2409_v23 = vmov 0.0  }
0x199a   :  { %v1542_v32 = vadd.f32 %v1534_v62, %v2879_v46  ;;  %v1538_v0 = vpop.f32.mrb[51].mxu0  ;;  %2147 = vmatprep.subr.bf16.mxu1 %v2409_v23  ;;  %2159 = vmatprep.subr.bf16.mxu0 %v2409_v23  ;;  %v2266_v19 = vld [vmem:[%s3062_s3 + $0x10] sm:$0xff]  }
0x199b   :  { %v1284_v0 = vadd.f32 %v2816_v7, %v2790_v38 }
0x199c   :  { %v2095_v26 = vmul.f32 -1.442695, %v1542_v32  ;;  %v2267_v32 = vld [vmem:[%s3062_s3 + $0x18] sm:$0xff]  }
0x199e   :  { %2362 = vpow2.f32 %v2095_v26  ;;  %v1353_v26 = vadd.f32 %v2857_v53, %v1284_v0 }
0x19a8   :  { %v2363_v44 = vpop.eup %2362 }
0x19a9   :  { %v1546_v35 = vadd.f32 1.0, %v2363_v44  ;;  %v1422_v44 = vadd.f32 %v2899_v43, %v1353_v26 }
0x19ab   :  { %2364 = vrcp.f32 %v1546_v35  ;;  %v2268_v35 = vld [vmem:[%s3062_s3 + $0x20] sm:$0xff]  }
0x19b5   :  { %v2365_v31 = vpop.eup %2364 }
0x19b6   :  { %v1549_v27 = vmul.f32 %v2365_v31, %v1536_v39  ;;  %v1552_v11 = vsub.f32 1.0, %v2365_v31  ;;  %v1558_v46 = vmul.f32 %v2365_v31, %v2917_v50  ;;  %v1491_v39 = vadd.f32 %v2917_v50, %v1422_v44  ;;  %v2270_v50 = vld [vmem:[%s3062_s3 + $0x30] sm:$0xff]  }
0x19b8   :  { %v1550_v10 = vadd.f32 %v1549_v27, %v1541_v47  ;;  %v2269_v47 = vld [vmem:[%s3062_s3 + $0x28] sm:$0xff]  }
0x19ba   :  { %2366 = vtanh.f32 %v1550_v10 }
0x19c4   :  { %v2367_v18 = vpop.eup %2366 }
0x19c5   :  { %1554 = vrot.lane.b32.xlu1 %v2367_v18, %s2408_s12 }
0x1a37   :  { %v1555_v12 = vpop.permute.xlu1 %1554 }
0x1a38   :  { %v1557_v29 = vmul.f32 %v1555_v12, %v1552_v11  ;;  %v2271_v12 = vld [vmem:[%s3062_s3 + $0x38] sm:$0xff]  }
0x1a3a   :  { %v2936_v13 = vadd.f32 %v1558_v46, %v1557_v29  ;;  %v2272_v29 = vld [vmem:[%s3062_s3 + $0x40] sm:$0xff]  }
0x1a3c   :  { %v1561_v37 = vpack.c.bf16 %v2936_v13, %v2936_v13  ;;  %v1560_v10 = vadd.f32 %v2936_v13, %v1491_v39 }
0x1a3e   :  { %1563 = vrot.lane.b32.xlu0 %v1561_v37, %s2408_s12 }
0x1ab0   :  { %v1564_v3 = vpop.permute.xlu0 %1563 }
0x1ab1   :  { %2096 = vmatmul.mubr.msk.bf16.vlgmr.msra.gmra.mrb[36].mxu1 %vm196_vm1, %v1564_v3  ;;  %v2274_v3 = vld [vmem:[%s3062_s3 + $0x50] sm:$0xff]  }
0x1ab2   :  { %2155 = vmatprep.mubr.msk.bf16.mxu1 %vm2410_vm3, %v2409_v23 }
0x1b84   :  { %v1602_v25 = vpop.f32.mrb[36].mxu1 }
0x1b85   :  { %v1603_v28 = vadd.f32 %v1602_v25, %v2770_v34  ;;  %v1604_v33 = vpop.f32.mrb[37].mxu1  ;;  %v2275_v25 = vld [vmem:[%s3062_s3 + $0x58] sm:$0xff]  }
0x1b86   :  { %v1606_v5 = vpop.f32.mrb[38].mxu1  ;;  %v1605_v9 = vadd.f32 %v1604_v33, %v2786_v8  ;;  %v2277_v33 = vld [vmem:[%s3062_s3 + $0x68] sm:$0xff]  }
0x1b87   :  { %v1611_v36 = vadd.f32 %v1603_v28, %v2885_v30  ;;  %v1607_v16 = vpop.f32.mrb[39].mxu1  ;;  %v2276_v28 = vld [vmem:[%s3062_s3 + $0x60] sm:$0xff]   ;;  %v2278_v5 = vld [vmem:[%s3062_s3 + $0x70] sm:$0xff]  }
0x1b88   :  { %v2280_v16 = vld [vmem:[%s3062_s3 + $0x80] sm:$0xff]  }
0x1b89   :  { %v2097_v40 = vmul.f32 -1.442695, %v1611_v36  ;;  %v2279_v36 = vld [vmem:[%s3062_s3 + $0x78] sm:$0xff]  }
0x1b8b   :  { %2368 = vpow2.f32 %v2097_v40  ;;  %v2281_v40 = vld [vmem:[%s3062_s3 + $0x88] sm:$0xff]  }
0x1b95   :  { %v2369_v42 = vpop.eup %2368 }
0x1b96   :  { %v1615_v6 = vadd.f32 1.0, %v2369_v42  ;;  %v2100_v42 = vld [vmem:[%s3063_s4] ss:$0 sm:$0xff] }
0x1b98   :  { %2370 = vrcp.f32 %v1615_v6 }
0x1ba2   :  { %v2371_v45 = vpop.eup %2370 }
0x1ba3   :  { %v1618_v48 = vmul.f32 %v2371_v45, %v1605_v9  ;;  %v1621_v54 = vsub.f32 1.0, %v2371_v45  ;;  %v1627_v30 = vmul.f32 %v2371_v45, %v2936_v13  ;;  %v2273_v13 = vld [vmem:[%s3062_s3 + $0x48] sm:$0xff]  }
0x1ba5   :  { %v1619_v51 = vadd.f32 %v1618_v48, %v1610_v49 }
0x1ba7   :  { %2372 = vtanh.f32 %v1619_v51 }
0x1bb1   :  { %v2373_v52 = vpop.eup %2372 }
0x1bb2   :  { %1623 = vrot.lane.b32.xlu1 %v2373_v52, %s2408_s12 }
0x1c24   :  { %v1624_v24 = vpop.permute.xlu1 %1623 }
0x1c25   :  { %v1626_v56 = vmul.f32 %v1624_v24, %v1621_v54  ;;  %v2282_v24 = vld [vmem:[%s3062_s3 + $0x90] sm:$0xff]  }
0x1c27   :  { %v1628_v2 = vadd.f32 %v1627_v30, %v1626_v56  ;;  %v2283_v30 = vld [vmem:[%s3062_s3 + $0x98] sm:$0xff]   ;;  %v2106_v56 = vld [vmem:[%s3063_s4 + $0x1] ss:$0 sm:$0xff] }
0x1c29   :  { %v1630_v55 = vpack.c.bf16 %v1628_v2, %v1628_v2  ;;  %v1629_v53 = vadd.f32 %v1628_v2, %v1560_v10 }
0x1c2b   :  { %1632 = vrot.lane.b32.xlu0 %v1630_v55, %s2408_s12 }
0x1c9d   :  { %v1633_v57 = vpop.permute.xlu0 %1632 }
0x1c9e   :  { %2098 = vmatmul.mubr.msk.bf16.vlgmr.msra.gmra.mrb[52].mxu0 %vm196_vm1, %v1633_v57 }
0x1c9f   :  { %2175 = vmatprep.mubr.msk.bf16.mxu0 %vm2410_vm3, %v2409_v23  ;;  %2160 = vmatpush3.bf16.msra.mxu0 %v2268_v35 }
0x1ca0   :  { %2161 = vmatprep.subr.bf16.mxu0 %v2409_v23 }
0x1ca3   :  { %2162 = vmatpush3.bf16.msra.mxu0 %v2269_v47 }
0x1ca4   :  { %2163 = vmatprep.subr.bf16.mxu0 %v2409_v23 }
0x1ca7   :  { %2164 = vmatpush3.bf16.msra.mxu0 %v2270_v50 }
0x1ca8   :  { %2165 = vmatprep.subr.bf16.mxu0 %v2409_v23 }
0x1cab   :  { %2166 = vmatpush3.bf16.msra.mxu0 %v2271_v12 }
0x1cac   :  { %2167 = vmatprep.subr.bf16.mxu0 %v2409_v23 }
0x1caf   :  { %2168 = vmatpush3.bf16.msra.mxu0 %v2272_v29 }
0x1cb0   :  { %2169 = vmatprep.subr.bf16.mxu0 %v2409_v23 }
0x1cb3   :  { %2170 = vmatpush3.bf16.msra.mxu0 %v2273_v13 }
0x1cb4   :  { %2171 = vmatprep.subr.bf16.mxu0 %v2409_v23 }
0x1cb7   :  { %2172 = vmatpush3.bf16.msra.mxu0 %v2274_v3 }
0x1cb8   :  { %2173 = vmatprep.subr.bf16.mxu0 %v2409_v23 }
0x1cbb   :  { %2174 = vmatpush3.bf16.msra.mxu0 %v2275_v25 }
0x1d71   :  { %v1671_v58 = vpop.f32.mrb[52].mxu0 }
0x1d72   :  { %v1672_v41 = vadd.f32 %v1671_v58, %v2770_v34  ;;  %v1673_v59 = vpop.f32.mrb[53].mxu0  ;;  %v2264_v34 = vld [vmem:[%s3062_s3] sm:$0xff]  }
0x1d73   :  { %v1675_v60 = vpop.f32.mrb[54].mxu0  ;;  %v1674_v20 = vadd.f32 %v1673_v59, %v2786_v8  ;;  %2148 = vmatpush3.bf16.msra.mxu1 %v2264_v34  ;;  %v2265_v8 = vld [vmem:[%s3062_s3 + $0x8] sm:$0xff]  }
0x1d74   :  { %v1680_v61 = vadd.f32 %v1672_v41, %v2889_v22  ;;  %v1676_v1 = vpop.f32.mrb[55].mxu0  ;;  %2149 = vmatprep.subr.bf16.mxu1 %v2409_v23 }
0x1d75   :  { %v2115_v1 = vld [vmem:[%s3063_s4 + $0x2] ss:$0 sm:$0xff] }
0x1d76   :  { %v2099_v15 = vmul.f32 -1.442695, %v1680_v61 }
0x1d77   :  { %2150 = vmatpush3.bf16.msra.mxu1 %v2265_v8 }
0x1d78   :  { %2374 = vpow2.f32 %v2099_v15  ;;  %2151 = vmatprep.subr.bf16.mxu1 %v2409_v23 }
0x1d7b   :  { %2152 = vmatpush3.bf16.msra.mxu1 %v2266_v19 }
0x1d7c   :  { %2153 = vmatprep.subr.bf16.mxu1 %v2409_v23 }
0x1d7f   :  { %2154 = vmatpush3.bf16.msra.mxu1 %v2267_v32 }
0x1d80   :  { %2179 = vmatprep.subr.bf16.mxu1 %v2409_v23 }
0x1d82   :  { %v2375_v17 = vpop.eup %2374 }
0x1d83   :  { %v1684_v63 = vadd.f32 1.0, %v2375_v17 }
0x1d85   :  { %2376 = vrcp.f32 %v1684_v63 }
0x1d8f   :  { %v2377_v21 = vpop.eup %2376 }
0x1d90   :  { %v1687_v4 = vmul.f32 %v2377_v21, %v1674_v20  ;;  %v1690_v31 = vsub.f32 1.0, %v2377_v21  ;;  %v1696_v38 = vmul.f32 %v2377_v21, %v1628_v2 }
0x1d92   :  { %v1688_v62 = vadd.f32 %v1687_v4, %v1679_v14 }
0x1d94   :  { %2378 = vtanh.f32 %v1688_v62 }
0x1d9e   :  { %v2379_v22 = vpop.eup %2378 }
0x1d9f   :  { %1692 = vrot.lane.b32.xlu1 %v2379_v22, %s2408_s12 }
0x1e11   :  { %v1693_v27 = vpop.permute.xlu1 %1692 }
0x1e12   :  { %v1695_v7 = vmul.f32 %v1693_v27, %v1690_v31 }
0x1e14   :  { %v1697_v43 = vadd.f32 %v1696_v38, %v1695_v7 }
0x1e16   :  { %v1698_v18 = vadd.f32 %v1697_v43, %v1629_v53 }
0x1e18   :  { %v1699_v11 = vmul.f32 0.125, %v1698_v18 }
0x1e1a   :  { %v1740_v46 = vpack.c.bf16 %v1699_v11, %v1699_v11 }
0x1e1c   :  { %1747 = vrot.lane.b32.xlu0 %v1740_v46, %s2408_s12 }
0x1e8e   :  { %v1748_v37 = vpop.permute.xlu0 %1747 }
0x1e8f   :  { %2156 = vmatmul.mubr.msk.bf16.vlgmr.msra.gmra.mrb[40].mxu1 %vm196_vm1, %v1748_v37 }
0x1e90   :  { %2195 = vmatprep.mubr.msk.bf16.mxu1 %vm2410_vm3, %v2409_v23  ;;  %2180 = vmatpush3.bf16.msra.mxu1 %v2276_v28 }
0x1e91   :  { %2181 = vmatprep.subr.bf16.mxu1 %v2409_v23 }
0x1e94   :  { %2182 = vmatpush3.bf16.msra.mxu1 %v2277_v33 }
0x1e95   :  { %2183 = vmatprep.subr.bf16.mxu1 %v2409_v23 }
0x1e98   :  { %2184 = vmatpush3.bf16.msra.mxu1 %v2278_v5 }
0x1e99   :  { %2185 = vmatprep.subr.bf16.mxu1 %v2409_v23 }
0x1e9c   :  { %2186 = vmatpush3.bf16.msra.mxu1 %v2279_v36 }
0x1e9d   :  { %2187 = vmatprep.subr.bf16.mxu1 %v2409_v23 }
0x1ea0   :  { %2188 = vmatpush3.bf16.msra.mxu1 %v2280_v16 }
0x1ea1   :  { %2189 = vmatprep.subr.bf16.mxu1 %v2409_v23 }
0x1ea4   :  { %2190 = vmatpush3.bf16.msra.mxu1 %v2281_v40 }
0x1ea5   :  { %2191 = vmatprep.subr.bf16.mxu1 %v2409_v23 }
0x1ea8   :  { %2192 = vmatpush3.bf16.msra.mxu1 %v2282_v24 }
0x1ea9   :  { %2193 = vmatprep.subr.bf16.mxu1 %v2409_v23 }
0x1eac   :  { %2194 = vmatpush3.bf16.msra.mxu1 %v2283_v30 }
0x1f62   :  { %v1810_v6 = vpop.f32.mrb[40].mxu1 }
0x1f63   :  { %v1811_v9 = vadd.f32 %v2100_v42, %v1810_v6  ;;  %v2157_v45 = vpop.f32.mrb[41].mxu1 }
0x1f64   :  { %v1813_v48 = vpop.f32.mrb[42].mxu1 }
0x1f65   :  { %vm1816_vm4 = vcmp.gt.f32.partialorder %v1811_v9, 0.0  ;;  %v1817_v49 = vmul.f32 0.01, %v1811_v9  ;;  %v2158_v51 = vpop.f32.mrb[43].mxu1 }
0x1f67   :  { %v1818_v52 = vsel %vm1816_vm4, %v1811_v9, %v1817_v49 }
0x1f68   :  { %v1819_v54 = vpack.c.bf16 %v1818_v52, %v1818_v52 }
0x1f6a   :  { %2176 = vmatmul.mubr.bf16.vlgmr.msra.gmra.mrb[56].mxu0 %v1819_v54 }
0x203d   :  { %v1907_v2 = vpop.f32.mrb[56].mxu0 }
0x203e   :  { %v1908_v55 = vadd.f32 %v2106_v56, %v1907_v2  ;;  %v2177_v57 = vpop.f32.mrb[57].mxu0 }
0x203f   :  { %v1910_v58 = vpop.f32.mrb[58].mxu0 }
0x2040   :  { %vm1913_vm5 = vcmp.gt.f32.partialorder %v1908_v55, 0.0  ;;  %v1914_v41 = vmul.f32 0.01, %v1908_v55  ;;  %v2178_v59 = vpop.f32.mrb[59].mxu0 }
0x2042   :  { %v1915_v60 = vsel %vm1913_vm5, %v1908_v55, %v1914_v41 }
0x2043   :  { %v1916_v61 = vpack.c.bf16 %v1915_v60, %v1915_v60 }
0x2045   :  { %2196 = vmatmul.mubr.bf16.vlgmr.msra.gmra.mrb[44].mxu1 %v1916_v61 }
0x2118   :  { %v2004_v15 = vpop.f32.mrb[44].mxu1 }
0x2119   :  { %v2005_v17 = vadd.f32 %v2115_v1, %v2004_v15  ;;  %v2197_v63 = vpop.f32.mrb[45].mxu1 }
0x211a   :  { %v2007_v20 = vpop.f32.mrb[46].mxu1 }
0x211b   :  { %2010 = vst [vmem:[%s3064_s5] sm:$0xff] %v2005_v17  ;;  %v2198_v21 = vpop.f32.mrb[47].mxu1 }
0x211c   :  { %2015 = vsyncpa [#allocation5], 1 }

</bundles_post_ra>
